<compile_context>
chip_gen: v7x
topology: tpu7x:2x2x1
jax: 0.10.0
libtpu: 0.0.40
codegen_flags: <defaults>
</compile_context>

<pallas_src>
import numpy as np
import jax
import jax.numpy as jnp
from jax.experimental import pallas as pl
from jax.experimental.pallas import tpu as pltpu


def lstm_fc_kernel(x_ref, wih_ref, whh_hbm_ref, b_ref, wfc_ref, bfc_ref,
                   out_ref, xp_ref, whh_vmem, dma_sem):
    """Single-layer LSTM over time + final Linear.

    x_ref       : (B, T, I)     batch-first input (VMEM)
    wih_ref     : (I, 4*Hp)     fused input->gate weights, gate order (i,f,o,g)
    whh_hbm_ref : (Hp, 4*Hp)    fused hidden->gate weights, raw HBM ref
    b_ref       : (1, 4*Hp)     combined bias b_ih + b_hh (gate order i,f,o,g)
    wfc_ref     : (Hp, O)       final linear weight (transposed, zero-pad rows)
    bfc_ref     : (1, O)        final linear bias
    out_ref     : (B, O)
    xp_ref      : (B, T, 4*Hp)  VMEM scratch: precomputed x-projection + bias
    whh_vmem    : (Hp, 4*Hp)    VMEM landing buffer for W_hh
    dma_sem     : DMA semaphore for the W_hh copy
    """
    B, T, I = x_ref.shape
    Hp, H4 = whh_vmem.shape

    # --- Start the W_hh HBM->VMEM DMA immediately; hidden behind the work
    # --- below (x-projection + peeled step 0).
    whh_cp = pltpu.make_async_copy(whh_hbm_ref, whh_vmem, dma_sem)
    whh_cp.start()

    # --- One-shot input projection + bias for ALL timesteps (off the serial
    # --- recurrence path).
    if I == 1:
        # Outer product: (B,T,1) * (1,1,4Hp) + (1,1,4Hp) -> pure VPU, no MXU.
        w_row = wih_ref[...].reshape(1, 1, H4)
        b_row = b_ref[...].reshape(1, 1, H4)
        xp = x_ref[...] * w_row + b_row                       # (B, T, 4Hp)
    else:
        x2 = x_ref[...].reshape(B * T, I)
        xp = (jnp.dot(x2, wih_ref[...], preferred_element_type=jnp.float32)
              + b_ref[...]).reshape(B, T, H4)
    xp_ref[...] = xp

    def sigm(v):
        # sigmoid(x) == 0.5 * tanh(0.5 * x) + 0.5 : single EUP push per vreg.
        return 0.5 * jnp.tanh(0.5 * v) + 0.5

    # --- Peeled timestep 0: h0 = c0 = 0  =>  z0 = xp[:, 0, :] exactly.
    # --- No h@W_hh MXU pass, no f*c term, no f-gate sigmoid needed.
    z0 = xp[:, 0, :]                                          # (B, 4Hp)
    i0 = sigm(z0[:, :Hp])
    o0 = sigm(z0[:, 2 * Hp:3 * Hp])
    g0 = jnp.tanh(z0[:, 3 * Hp:])
    c = i0 * g0
    h = o0 * jnp.tanh(c)

    # Wait for W_hh only now, right before its first use; hoist the load.
    whh_cp.wait()
    whh = whh_vmem[...]                                       # (Hp, 4Hp)

    # --- Remaining T-1 steps, fully static unroll (T is tiny) so the LLO
    # --- scheduler can interleave pointwise work of step t with the MXU
    # --- latency of step t+1's h @ W_hh.
    # TODO(synk): if a bundle dump shows Mosaic re-pushing the identical W_hh
    # into the MXU weight registers every step, switch to explicit
    # weight-stationary driving (pltpu.matmul_push_rhs / matmul_acc_lhs /
    # matmul_pop), verified per generation (MRF on v5e/v6e vs MRB on v7x).
    for t in range(1, T):
        # One fused MXU pass per timestep; x-path already precomputed.
        z = xp_ref[:, t, :] + jnp.dot(h, whh,
                                      preferred_element_type=jnp.float32)
        # Gate order (i, f, o, g): one sigmoid slab + one tanh, 128-lane
        # aligned slices.
        s = sigm(z[:, :3 * Hp])                               # i | f | o
        i_g = s[:, :Hp]
        f_g = s[:, Hp:2 * Hp]
        o_g = s[:, 2 * Hp:3 * Hp]
        g = jnp.tanh(z[:, 3 * Hp:])                           # g
        c = f_g * c + i_g * g
        h = o_g * jnp.tanh(c)

    # Final Linear on the last timestep's hidden state.
    out_ref[...] = (jnp.dot(h, wfc_ref[...], preferred_element_type=jnp.float32)
                    + bfc_ref[...])


def pack_params(W_ih, W_hh, b_ih, b_hh, W_fc, b_fc, lane=128):
    """One-time repack of PyTorch-layout weights into the kernel layout.

    PyTorch layout: W_ih (4H, I), W_hh (4H, H), b_* (4H,) with gate order
    (i, f, g, o); W_fc (O, H), b_fc (O,).
    Kernel layout: gate order (i, f, o, g), each gate zero-padded to
    Hp = ceil(H / 128) * 128 lanes, weights transposed for h @ W.
    """
    H = W_hh.shape[1]
    I = W_ih.shape[1]
    O = W_fc.shape[0]
    Hp = -(-H // lane) * lane

    def split(w):                         # (4H, X) -> 4 x (H, X)
        return [w[k * H:(k + 1) * H] for k in range(4)]

    order = [0, 1, 3, 2]                  # (i, f, g, o) -> (i, f, o, g)
    wih_g = split(W_ih)                   # each (H, I)
    whh_g = split(W_hh)                   # each (H, H)
    b_g = split((b_ih + b_hh).reshape(4 * H, 1))   # each (H, 1)

    def pad_cols(m):                      # (X, H) -> (X, Hp)
        return jnp.pad(m, ((0, 0), (0, Hp - H)))

    wih_k = jnp.concatenate([pad_cols(wih_g[k].T) for k in order], axis=1)  # (I, 4Hp)
    whh_k = jnp.concatenate([pad_cols(whh_g[k].T) for k in order], axis=1)  # (H, 4Hp)
    whh_k = jnp.pad(whh_k, ((0, Hp - H), (0, 0)))                           # (Hp, 4Hp)
    b_k = jnp.concatenate([pad_cols(b_g[k].T) for k in order], axis=1)      # (1, 4Hp)
    wfc_k = jnp.pad(W_fc.T, ((0, Hp - H), (0, 0)))                          # (Hp, O)
    bfc_k = b_fc.reshape(1, O)                                              # (1, O)
    return (jnp.asarray(wih_k, jnp.float32), jnp.asarray(whh_k, jnp.float32),
            jnp.asarray(b_k, jnp.float32), jnp.asarray(wfc_k, jnp.float32),
            jnp.asarray(bfc_k, jnp.float32))


@jax.jit
def lstm_model_forward(x, packed):
    """Forward pass equivalent to LSTMModel.forward (zero initial h/c).

    x: (B, T, I) float32, batch-first (same as PyTorch batch_first=True).
    packed: output of pack_params(). Returns (B, O).
    """
    wih_k, whh_k, b_k, wfc_k, bfc_k = packed
    B, T, I = x.shape
    Hp, H4 = whh_k.shape
    O = wfc_k.shape[1]

    vmem = pl.BlockSpec(memory_space=pltpu.MemorySpace.VMEM)
    hbm = pl.BlockSpec(memory_space=pl.ANY)   # W_hh: raw HBM ref, manual DMA
    out = pl.pallas_call(
        lstm_fc_kernel,
        out_shape=jax.ShapeDtypeStruct((B, O), jnp.float32),
        in_specs=[vmem, vmem, hbm, vmem, vmem, vmem],
        out_specs=vmem,
        scratch_shapes=[
            pltpu.VMEM((B, T, H4), jnp.float32),   # xp: hoisted x-projection
            pltpu.VMEM((Hp, H4), jnp.float32),     # W_hh VMEM landing buffer
            pltpu.SemaphoreType.DMA,               # W_hh DMA completion sem
        ],
    )(x, wih_k, whh_k, b_k, wfc_k, bfc_k)
    return out


def ref_forward(x, W_ih, W_hh, b_ih, b_hh, W_fc, b_fc):
    """Pure-JAX reference implementing PyTorch LSTM + Linear semantics."""
    B, T, I = x.shape
    H = W_hh.shape[1]
    h = jnp.zeros((B, H), jnp.float32)
    c = jnp.zeros((B, H), jnp.float32)
    for t in range(T):
        g = x[:, t, :] @ W_ih.T + b_ih + h @ W_hh.T + b_hh
        i_ = jax.nn.sigmoid(g[:, 0:H])
        f_ = jax.nn.sigmoid(g[:, H:2 * H])
        gg = jnp.tanh(g[:, 2 * H:3 * H])
        o_ = jax.nn.sigmoid(g[:, 3 * H:4 * H])
        c = f_ * c + i_ * gg
        h = o_ * jnp.tanh(c)
    return h @ W_fc.T + b_fc


if __name__ == "__main__":
    # Module defaults: input_size=1, hidden_size=50, num_layers=1, output_size=2
    B, T, I, H, O = 2, 8, 1, 50, 2

    key = jax.random.PRNGKey(0)
    ks = jax.random.split(key, 7)
    bound = 1.0 / np.sqrt(H)

    x = jax.random.normal(ks[0], (B, T, I), dtype=jnp.float32)
    W_ih = jax.random.uniform(ks[1], (4 * H, I), jnp.float32, -bound, bound)
    W_hh = jax.random.uniform(ks[2], (4 * H, H), jnp.float32, -bound, bound)
    b_ih = jax.random.uniform(ks[3], (4 * H,), jnp.float32, -bound, bound)
    b_hh = jax.random.uniform(ks[4], (4 * H,), jnp.float32, -bound, bound)
    W_fc = jax.random.uniform(ks[5], (O, H), jnp.float32, -bound, bound)
    b_fc = jax.random.uniform(ks[6], (O,), jnp.float32, -bound, bound)

    # Repack once, outside the per-call forward path.
    packed = jax.tree_util.tree_map(jax.block_until_ready,
                                    pack_params(W_ih, W_hh, b_ih, b_hh, W_fc, b_fc))

    out = lstm_model_forward(x, packed)
    out = jax.block_until_ready(out)

    ref = ref_forward(x, W_ih, W_hh, b_ih, b_hh, W_fc, b_fc)
    np.testing.assert_allclose(np.asarray(out), np.asarray(ref),
                               rtol=1e-4, atol=2e-5)

    print("KERNEL_OK")
</pallas_src>

<mosaic_0001>
module attributes {stable_mosaic.version = 11 : i64} {
  func.func @lstm_fc_kernel(%arg0: memref<2x8x1xf32, #tpu.memory_space<vmem>>, %arg1: memref<1x512xf32, #tpu.memory_space<vmem>>, %arg2: memref<128x512xf32, #tpu.memory_space<any>>, %arg3: memref<1x512xf32, #tpu.memory_space<vmem>>, %arg4: memref<128x2xf32, #tpu.memory_space<vmem>>, %arg5: memref<1x2xf32, #tpu.memory_space<vmem>>, %arg6: memref<2x2xf32, #tpu.memory_space<vmem>>, %arg7: memref<2x8x512xf32, #tpu.memory_space<vmem>>, %arg8: memref<128x512xf32, #tpu.memory_space<vmem>>, %arg9: memref<!tpu.dma_semaphore, #tpu.memory_space<semaphore_mem>>) attributes {dimension_semantics = [], scalar_prefetch = 0 : i64, scratch_operands = 3 : i64, tpu.core_type = #tpu.core_type<tc>} {
    tpu.enqueue_dma source(%arg2 : memref<128x512xf32, #tpu.memory_space<any>>) target(%arg8 : memref<128x512xf32, #tpu.memory_space<vmem>>) target_semaphore(%arg9 : memref<!tpu.dma_semaphore, #tpu.memory_space<semaphore_mem>>)
    %c0 = arith.constant 0 : index
    %c0_0 = arith.constant 0 : index
    %0 = vector.load %arg1[%c0, %c0_0] : memref<1x512xf32, #tpu.memory_space<vmem>>, vector<1x512xf32>
    %1 = vector.shape_cast %0 : vector<1x512xf32> to vector<1x1x512xf32>
    %c0_1 = arith.constant 0 : index
    %c0_2 = arith.constant 0 : index
    %2 = vector.load %arg3[%c0_1, %c0_2] : memref<1x512xf32, #tpu.memory_space<vmem>>, vector<1x512xf32>
    %3 = vector.shape_cast %2 : vector<1x512xf32> to vector<1x1x512xf32>
    %c0_3 = arith.constant 0 : index
    %c0_4 = arith.constant 0 : index
    %c0_5 = arith.constant 0 : index
    %4 = vector.load %arg0[%c0_3, %c0_4, %c0_5] : memref<2x8x1xf32, #tpu.memory_space<vmem>>, vector<2x8x1xf32>
    %5 = vector.broadcast %4 : vector<2x8x1xf32> to vector<2x8x512xf32>
    %6 = vector.broadcast %1 : vector<1x1x512xf32> to vector<2x8x512xf32>
    %7 = arith.mulf %5, %6 : vector<2x8x512xf32>
    %8 = vector.broadcast %3 : vector<1x1x512xf32> to vector<2x8x512xf32>
    %9 = arith.addf %7, %8 : vector<2x8x512xf32>
    %c0_6 = arith.constant 0 : index
    %c0_7 = arith.constant 0 : index
    %c0_8 = arith.constant 0 : index
    %10 = vector.load %arg7[%c0_6, %c0_7, %c0_8] : memref<2x8x512xf32, #tpu.memory_space<vmem>>, vector<2x8x512xf32>
    tpu.vector_store %arg7[%c0_6, %c0_7, %c0_8], %9 {strides = array<i32>} : memref<2x8x512xf32, #tpu.memory_space<vmem>>, vector<2x8x512xf32>,
    %11 = vector.extract_strided_slice %9 {offsets = [0, 0, 0], sizes = [2, 1, 512], strides = [1, 1, 1]} : vector<2x8x512xf32> to vector<2x1x512xf32>
    %12 = vector.shape_cast %11 : vector<2x1x512xf32> to vector<2x512xf32>
    %13 = vector.extract_strided_slice %12 {offsets = [0, 0], sizes = [2, 128], strides = [1, 1]} : vector<2x512xf32> to vector<2x128xf32>
    %cst = arith.constant 5.000000e-01 : f32
    %14 = vector.broadcast %cst : f32 to vector<2x128xf32>
    %15 = arith.mulf %14, %13 : vector<2x128xf32>
    %16 = math.tanh %15 : vector<2x128xf32>
    %cst_9 = arith.constant 5.000000e-01 : f32
    %17 = vector.broadcast %cst_9 : f32 to vector<2x128xf32>
    %18 = arith.mulf %17, %16 : vector<2x128xf32>
    %cst_10 = arith.constant 5.000000e-01 : f32
    %19 = vector.broadcast %cst_10 : f32 to vector<2x128xf32>
    %20 = arith.addf %18, %19 : vector<2x128xf32>
    %21 = vector.extract_strided_slice %12 {offsets = [0, 256], sizes = [2, 128], strides = [1, 1]} : vector<2x512xf32> to vector<2x128xf32>
    %cst_11 = arith.constant 5.000000e-01 : f32
    %22 = vector.broadcast %cst_11 : f32 to vector<2x128xf32>
    %23 = arith.mulf %22, %21 : vector<2x128xf32>
    %24 = math.tanh %23 : vector<2x128xf32>
    %cst_12 = arith.constant 5.000000e-01 : f32
    %25 = vector.broadcast %cst_12 : f32 to vector<2x128xf32>
    %26 = arith.mulf %25, %24 : vector<2x128xf32>
    %cst_13 = arith.constant 5.000000e-01 : f32
    %27 = vector.broadcast %cst_13 : f32 to vector<2x128xf32>
    %28 = arith.addf %26, %27 : vector<2x128xf32>
    %29 = vector.extract_strided_slice %12 {offsets = [0, 384], sizes = [2, 128], strides = [1, 1]} : vector<2x512xf32> to vector<2x128xf32>
    %30 = math.tanh %29 : vector<2x128xf32>
    %31 = arith.mulf %20, %30 : vector<2x128xf32>
    %32 = math.tanh %31 : vector<2x128xf32>
    %33 = arith.mulf %28, %32 : vector<2x128xf32>
    tpu.wait_dma2 semaphore(%arg9 : memref<!tpu.dma_semaphore, #tpu.memory_space<semaphore_mem>>) src(%arg2 : memref<128x512xf32, #tpu.memory_space<any>>) dst(%arg8 : memref<128x512xf32, #tpu.memory_space<vmem>>)
    %c0_14 = arith.constant 0 : index
    %c0_15 = arith.constant 0 : index
    %34 = vector.load %arg8[%c0_14, %c0_15] : memref<128x512xf32, #tpu.memory_space<vmem>>, vector<128x512xf32>
    %c0_16 = arith.constant 0 : index
    %c1 = arith.constant 1 : index
    %c0_17 = arith.constant 0 : index
    %35 = vector.load %arg7[%c0_16, %c1, %c0_17] : memref<2x8x512xf32, #tpu.memory_space<vmem>>, vector<2x1x512xf32>
    %36 = vector.shape_cast %35 : vector<2x1x512xf32> to vector<2x512xf32>
    %cst_18 = arith.constant dense<0.000000e+00> : vector<2x512xf32>
    %37 = tpu.matmul %33, %34, %cst_18 {dimension_numbers = #tpu.dot_dimension_numbers<[1], [0], [0], [1], [0, 0, 1, 1], [], []>} : vector<2x128xf32>, vector<128x512xf32>, vector<2x512xf32> -> vector<2x512xf32>
    %38 = arith.addf %36, %37 : vector<2x512xf32>
    %39 = vector.extract_strided_slice %38 {offsets = [0, 0], sizes = [2, 384], strides = [1, 1]} : vector<2x512xf32> to vector<2x384xf32>
    %cst_19 = arith.constant 5.000000e-01 : f32
    %40 = vector.broadcast %cst_19 : f32 to vector<2x384xf32>
    %41 = arith.mulf %40, %39 : vector<2x384xf32>
    %42 = math.tanh %41 : vector<2x384xf32>
    %cst_20 = arith.constant 5.000000e-01 : f32
    %43 = vector.broadcast %cst_20 : f32 to vector<2x384xf32>
    %44 = arith.mulf %43, %42 : vector<2x384xf32>
    %cst_21 = arith.constant 5.000000e-01 : f32
    %45 = vector.broadcast %cst_21 : f32 to vector<2x384xf32>
    %46 = arith.addf %44, %45 : vector<2x384xf32>
    %47 = vector.extract_strided_slice %46 {offsets = [0, 0], sizes = [2, 128], strides = [1, 1]} : vector<2x384xf32> to vector<2x128xf32>
    %48 = vector.extract_strided_slice %46 {offsets = [0, 128], sizes = [2, 128], strides = [1, 1]} : vector<2x384xf32> to vector<2x128xf32>
    %49 = vector.extract_strided_slice %46 {offsets = [0, 256], sizes = [2, 128], strides = [1, 1]} : vector<2x384xf32> to vector<2x128xf32>
    %50 = vector.extract_strided_slice %38 {offsets = [0, 384], sizes = [2, 128], strides = [1, 1]} : vector<2x512xf32> to vector<2x128xf32>
    %51 = math.tanh %50 : vector<2x128xf32>
    %52 = arith.mulf %48, %31 : vector<2x128xf32>
    %53 = arith.mulf %47, %51 : vector<2x128xf32>
    %54 = arith.addf %52, %53 : vector<2x128xf32>
    %55 = math.tanh %54 : vector<2x128xf32>
    %56 = arith.mulf %49, %55 : vector<2x128xf32>
    %c0_22 = arith.constant 0 : index
    %c2 = arith.constant 2 : index
    %c0_23 = arith.constant 0 : index
    %57 = vector.load %arg7[%c0_22, %c2, %c0_23] : memref<2x8x512xf32, #tpu.memory_space<vmem>>, vector<2x1x512xf32>
    %58 = vector.shape_cast %57 : vector<2x1x512xf32> to vector<2x512xf32>
    %cst_24 = arith.constant dense<0.000000e+00> : vector<2x512xf32>
    %59 = tpu.matmul %56, %34, %cst_24 {dimension_numbers = #tpu.dot_dimension_numbers<[1], [0], [0], [1], [0, 0, 1, 1], [], []>} : vector<2x128xf32>, vector<128x512xf32>, vector<2x512xf32> -> vector<2x512xf32>
    %60 = arith.addf %58, %59 : vector<2x512xf32>
    %61 = vector.extract_strided_slice %60 {offsets = [0, 0], sizes = [2, 384], strides = [1, 1]} : vector<2x512xf32> to vector<2x384xf32>
    %cst_25 = arith.constant 5.000000e-01 : f32
    %62 = vector.broadcast %cst_25 : f32 to vector<2x384xf32>
    %63 = arith.mulf %62, %61 : vector<2x384xf32>
    %64 = math.tanh %63 : vector<2x384xf32>
    %cst_26 = arith.constant 5.000000e-01 : f32
    %65 = vector.broadcast %cst_26 : f32 to vector<2x384xf32>
    %66 = arith.mulf %65, %64 : vector<2x384xf32>
    %cst_27 = arith.constant 5.000000e-01 : f32
    %67 = vector.broadcast %cst_27 : f32 to vector<2x384xf32>
    %68 = arith.addf %66, %67 : vector<2x384xf32>
    %69 = vector.extract_strided_slice %68 {offsets = [0, 0], sizes = [2, 128], strides = [1, 1]} : vector<2x384xf32> to vector<2x128xf32>
    %70 = vector.extract_strided_slice %68 {offsets = [0, 128], sizes = [2, 128], strides = [1, 1]} : vector<2x384xf32> to vector<2x128xf32>
    %71 = vector.extract_strided_slice %68 {offsets = [0, 256], sizes = [2, 128], strides = [1, 1]} : vector<2x384xf32> to vector<2x128xf32>
    %72 = vector.extract_strided_slice %60 {offsets = [0, 384], sizes = [2, 128], strides = [1, 1]} : vector<2x512xf32> to vector<2x128xf32>
    %73 = math.tanh %72 : vector<2x128xf32>
    %74 = arith.mulf %70, %54 : vector<2x128xf32>
    %75 = arith.mulf %69, %73 : vector<2x128xf32>
    %76 = arith.addf %74, %75 : vector<2x128xf32>
    %77 = math.tanh %76 : vector<2x128xf32>
    %78 = arith.mulf %71, %77 : vector<2x128xf32>
    %c0_28 = arith.constant 0 : index
    %c3 = arith.constant 3 : index
    %c0_29 = arith.constant 0 : index
    %79 = vector.load %arg7[%c0_28, %c3, %c0_29] : memref<2x8x512xf32, #tpu.memory_space<vmem>>, vector<2x1x512xf32>
    %80 = vector.shape_cast %79 : vector<2x1x512xf32> to vector<2x512xf32>
    %cst_30 = arith.constant dense<0.000000e+00> : vector<2x512xf32>
    %81 = tpu.matmul %78, %34, %cst_30 {dimension_numbers = #tpu.dot_dimension_numbers<[1], [0], [0], [1], [0, 0, 1, 1], [], []>} : vector<2x128xf32>, vector<128x512xf32>, vector<2x512xf32> -> vector<2x512xf32>
    %82 = arith.addf %80, %81 : vector<2x512xf32>
    %83 = vector.extract_strided_slice %82 {offsets = [0, 0], sizes = [2, 384], strides = [1, 1]} : vector<2x512xf32> to vector<2x384xf32>
    %cst_31 = arith.constant 5.000000e-01 : f32
    %84 = vector.broadcast %cst_31 : f32 to vector<2x384xf32>
    %85 = arith.mulf %84, %83 : vector<2x384xf32>
    %86 = math.tanh %85 : vector<2x384xf32>
    %cst_32 = arith.constant 5.000000e-01 : f32
    %87 = vector.broadcast %cst_32 : f32 to vector<2x384xf32>
    %88 = arith.mulf %87, %86 : vector<2x384xf32>
    %cst_33 = arith.constant 5.000000e-01 : f32
    %89 = vector.broadcast %cst_33 : f32 to vector<2x384xf32>
    %90 = arith.addf %88, %89 : vector<2x384xf32>
    %91 = vector.extract_strided_slice %90 {offsets = [0, 0], sizes = [2, 128], strides = [1, 1]} : vector<2x384xf32> to vector<2x128xf32>
    %92 = vector.extract_strided_slice %90 {offsets = [0, 128], sizes = [2, 128], strides = [1, 1]} : vector<2x384xf32> to vector<2x128xf32>
    %93 = vector.extract_strided_slice %90 {offsets = [0, 256], sizes = [2, 128], strides = [1, 1]} : vector<2x384xf32> to vector<2x128xf32>
    %94 = vector.extract_strided_slice %82 {offsets = [0, 384], sizes = [2, 128], strides = [1, 1]} : vector<2x512xf32> to vector<2x128xf32>
    %95 = math.tanh %94 : vector<2x128xf32>
    %96 = arith.mulf %92, %76 : vector<2x128xf32>
    %97 = arith.mulf %91, %95 : vector<2x128xf32>
    %98 = arith.addf %96, %97 : vector<2x128xf32>
    %99 = math.tanh %98 : vector<2x128xf32>
    %100 = arith.mulf %93, %99 : vector<2x128xf32>
    %c0_34 = arith.constant 0 : index
    %c4 = arith.constant 4 : index
    %c0_35 = arith.constant 0 : index
    %101 = vector.load %arg7[%c0_34, %c4, %c0_35] : memref<2x8x512xf32, #tpu.memory_space<vmem>>, vector<2x1x512xf32>
    %102 = vector.shape_cast %101 : vector<2x1x512xf32> to vector<2x512xf32>
    %cst_36 = arith.constant dense<0.000000e+00> : vector<2x512xf32>
    %103 = tpu.matmul %100, %34, %cst_36 {dimension_numbers = #tpu.dot_dimension_numbers<[1], [0], [0], [1], [0, 0, 1, 1], [], []>} : vector<2x128xf32>, vector<128x512xf32>, vector<2x512xf32> -> vector<2x512xf32>
    %104 = arith.addf %102, %103 : vector<2x512xf32>
    %105 = vector.extract_strided_slice %104 {offsets = [0, 0], sizes = [2, 384], strides = [1, 1]} : vector<2x512xf32> to vector<2x384xf32>
    %cst_37 = arith.constant 5.000000e-01 : f32
    %106 = vector.broadcast %cst_37 : f32 to vector<2x384xf32>
    %107 = arith.mulf %106, %105 : vector<2x384xf32>
    %108 = math.tanh %107 : vector<2x384xf32>
    %cst_38 = arith.constant 5.000000e-01 : f32
    %109 = vector.broadcast %cst_38 : f32 to vector<2x384xf32>
    %110 = arith.mulf %109, %108 : vector<2x384xf32>
    %cst_39 = arith.constant 5.000000e-01 : f32
    %111 = vector.broadcast %cst_39 : f32 to vector<2x384xf32>
    %112 = arith.addf %110, %111 : vector<2x384xf32>
    %113 = vector.extract_strided_slice %112 {offsets = [0, 0], sizes = [2, 128], strides = [1, 1]} : vector<2x384xf32> to vector<2x128xf32>
    %114 = vector.extract_strided_slice %112 {offsets = [0, 128], sizes = [2, 128], strides = [1, 1]} : vector<2x384xf32> to vector<2x128xf32>
    %115 = vector.extract_strided_slice %112 {offsets = [0, 256], sizes = [2, 128], strides = [1, 1]} : vector<2x384xf32> to vector<2x128xf32>
    %116 = vector.extract_strided_slice %104 {offsets = [0, 384], sizes = [2, 128], strides = [1, 1]} : vector<2x512xf32> to vector<2x128xf32>
    %117 = math.tanh %116 : vector<2x128xf32>
    %118 = arith.mulf %114, %98 : vector<2x128xf32>
    %119 = arith.mulf %113, %117 : vector<2x128xf32>
    %120 = arith.addf %118, %119 : vector<2x128xf32>
    %121 = math.tanh %120 : vector<2x128xf32>
    %122 = arith.mulf %115, %121 : vector<2x128xf32>
    %c0_40 = arith.constant 0 : index
    %c5 = arith.constant 5 : index
    %c0_41 = arith.constant 0 : index
    %123 = vector.load %arg7[%c0_40, %c5, %c0_41] : memref<2x8x512xf32, #tpu.memory_space<vmem>>, vector<2x1x512xf32>
    %124 = vector.shape_cast %123 : vector<2x1x512xf32> to vector<2x512xf32>
    %cst_42 = arith.constant dense<0.000000e+00> : vector<2x512xf32>
    %125 = tpu.matmul %122, %34, %cst_42 {dimension_numbers = #tpu.dot_dimension_numbers<[1], [0], [0], [1], [0, 0, 1, 1], [], []>} : vector<2x128xf32>, vector<128x512xf32>, vector<2x512xf32> -> vector<2x512xf32>
    %126 = arith.addf %124, %125 : vector<2x512xf32>
    %127 = vector.extract_strided_slice %126 {offsets = [0, 0], sizes = [2, 384], strides = [1, 1]} : vector<2x512xf32> to vector<2x384xf32>
    %cst_43 = arith.constant 5.000000e-01 : f32
    %128 = vector.broadcast %cst_43 : f32 to vector<2x384xf32>
    %129 = arith.mulf %128, %127 : vector<2x384xf32>
    %130 = math.tanh %129 : vector<2x384xf32>
    %cst_44 = arith.constant 5.000000e-01 : f32
    %131 = vector.broadcast %cst_44 : f32 to vector<2x384xf32>
    %132 = arith.mulf %131, %130 : vector<2x384xf32>
    %cst_45 = arith.constant 5.000000e-01 : f32
    %133 = vector.broadcast %cst_45 : f32 to vector<2x384xf32>
    %134 = arith.addf %132, %133 : vector<2x384xf32>
    %135 = vector.extract_strided_slice %134 {offsets = [0, 0], sizes = [2, 128], strides = [1, 1]} : vector<2x384xf32> to vector<2x128xf32>
    %136 = vector.extract_strided_slice %134 {offsets = [0, 128], sizes = [2, 128], strides = [1, 1]} : vector<2x384xf32> to vector<2x128xf32>
    %137 = vector.extract_strided_slice %134 {offsets = [0, 256], sizes = [2, 128], strides = [1, 1]} : vector<2x384xf32> to vector<2x128xf32>
    %138 = vector.extract_strided_slice %126 {offsets = [0, 384], sizes = [2, 128], strides = [1, 1]} : vector<2x512xf32> to vector<2x128xf32>
    %139 = math.tanh %138 : vector<2x128xf32>
    %140 = arith.mulf %136, %120 : vector<2x128xf32>
    %141 = arith.mulf %135, %139 : vector<2x128xf32>
    %142 = arith.addf %140, %141 : vector<2x128xf32>
    %143 = math.tanh %142 : vector<2x128xf32>
    %144 = arith.mulf %137, %143 : vector<2x128xf32>
    %c0_46 = arith.constant 0 : index
    %c6 = arith.constant 6 : index
    %c0_47 = arith.constant 0 : index
    %145 = vector.load %arg7[%c0_46, %c6, %c0_47] : memref<2x8x512xf32, #tpu.memory_space<vmem>>, vector<2x1x512xf32>
    %146 = vector.shape_cast %145 : vector<2x1x512xf32> to vector<2x512xf32>
    %cst_48 = arith.constant dense<0.000000e+00> : vector<2x512xf32>
    %147 = tpu.matmul %144, %34, %cst_48 {dimension_numbers = #tpu.dot_dimension_numbers<[1], [0], [0], [1], [0, 0, 1, 1], [], []>} : vector<2x128xf32>, vector<128x512xf32>, vector<2x512xf32> -> vector<2x512xf32>
    %148 = arith.addf %146, %147 : vector<2x512xf32>
    %149 = vector.extract_strided_slice %148 {offsets = [0, 0], sizes = [2, 384], strides = [1, 1]} : vector<2x512xf32> to vector<2x384xf32>
    %cst_49 = arith.constant 5.000000e-01 : f32
    %150 = vector.broadcast %cst_49 : f32 to vector<2x384xf32>
    %151 = arith.mulf %150, %149 : vector<2x384xf32>
    %152 = math.tanh %151 : vector<2x384xf32>
    %cst_50 = arith.constant 5.000000e-01 : f32
    %153 = vector.broadcast %cst_50 : f32 to vector<2x384xf32>
    %154 = arith.mulf %153, %152 : vector<2x384xf32>
    %cst_51 = arith.constant 5.000000e-01 : f32
    %155 = vector.broadcast %cst_51 : f32 to vector<2x384xf32>
    %156 = arith.addf %154, %155 : vector<2x384xf32>
    %157 = vector.extract_strided_slice %156 {offsets = [0, 0], sizes = [2, 128], strides = [1, 1]} : vector<2x384xf32> to vector<2x128xf32>
    %158 = vector.extract_strided_slice %156 {offsets = [0, 128], sizes = [2, 128], strides = [1, 1]} : vector<2x384xf32> to vector<2x128xf32>
    %159 = vector.extract_strided_slice %156 {offsets = [0, 256], sizes = [2, 128], strides = [1, 1]} : vector<2x384xf32> to vector<2x128xf32>
    %160 = vector.extract_strided_slice %148 {offsets = [0, 384], sizes = [2, 128], strides = [1, 1]} : vector<2x512xf32> to vector<2x128xf32>
    %161 = math.tanh %160 : vector<2x128xf32>
    %162 = arith.mulf %158, %142 : vector<2x128xf32>
    %163 = arith.mulf %157, %161 : vector<2x128xf32>
    %164 = arith.addf %162, %163 : vector<2x128xf32>
    %165 = math.tanh %164 : vector<2x128xf32>
    %166 = arith.mulf %159, %165 : vector<2x128xf32>
    %c0_52 = arith.constant 0 : index
    %c7 = arith.constant 7 : index
    %c0_53 = arith.constant 0 : index
    %167 = vector.load %arg7[%c0_52, %c7, %c0_53] : memref<2x8x512xf32, #tpu.memory_space<vmem>>, vector<2x1x512xf32>
    %168 = vector.shape_cast %167 : vector<2x1x512xf32> to vector<2x512xf32>
    %cst_54 = arith.constant dense<0.000000e+00> : vector<2x512xf32>
    %169 = tpu.matmul %166, %34, %cst_54 {dimension_numbers = #tpu.dot_dimension_numbers<[1], [0], [0], [1], [0, 0, 1, 1], [], []>} : vector<2x128xf32>, vector<128x512xf32>, vector<2x512xf32> -> vector<2x512xf32>
    %170 = arith.addf %168, %169 : vector<2x512xf32>
    %171 = vector.extract_strided_slice %170 {offsets = [0, 0], sizes = [2, 384], strides = [1, 1]} : vector<2x512xf32> to vector<2x384xf32>
    %cst_55 = arith.constant 5.000000e-01 : f32
    %172 = vector.broadcast %cst_55 : f32 to vector<2x384xf32>
    %173 = arith.mulf %172, %171 : vector<2x384xf32>
    %174 = math.tanh %173 : vector<2x384xf32>
    %cst_56 = arith.constant 5.000000e-01 : f32
    %175 = vector.broadcast %cst_56 : f32 to vector<2x384xf32>
    %176 = arith.mulf %175, %174 : vector<2x384xf32>
    %cst_57 = arith.constant 5.000000e-01 : f32
    %177 = vector.broadcast %cst_57 : f32 to vector<2x384xf32>
    %178 = arith.addf %176, %177 : vector<2x384xf32>
    %179 = vector.extract_strided_slice %178 {offsets = [0, 0], sizes = [2, 128], strides = [1, 1]} : vector<2x384xf32> to vector<2x128xf32>
    %180 = vector.extract_strided_slice %178 {offsets = [0, 128], sizes = [2, 128], strides = [1, 1]} : vector<2x384xf32> to vector<2x128xf32>
    %181 = vector.extract_strided_slice %178 {offsets = [0, 256], sizes = [2, 128], strides = [1, 1]} : vector<2x384xf32> to vector<2x128xf32>
    %182 = vector.extract_strided_slice %170 {offsets = [0, 384], sizes = [2, 128], strides = [1, 1]} : vector<2x512xf32> to vector<2x128xf32>
    %183 = math.tanh %182 : vector<2x128xf32>
    %184 = arith.mulf %180, %164 : vector<2x128xf32>
    %185 = arith.mulf %179, %183 : vector<2x128xf32>
    %186 = arith.addf %184, %185 : vector<2x128xf32>
    %187 = math.tanh %186 : vector<2x128xf32>
    %188 = arith.mulf %181, %187 : vector<2x128xf32>
    %c0_58 = arith.constant 0 : index
    %c0_59 = arith.constant 0 : index
    %189 = vector.load %arg4[%c0_58, %c0_59] : memref<128x2xf32, #tpu.memory_space<vmem>>, vector<128x2xf32>
    %cst_60 = arith.constant dense<0.000000e+00> : vector<2x2xf32>
    %190 = tpu.matmul %188, %189, %cst_60 {dimension_numbers = #tpu.dot_dimension_numbers<[1], [0], [0], [1], [0, 0, 1, 1], [], []>} : vector<2x128xf32>, vector<128x2xf32>, vector<2x2xf32> -> vector<2x2xf32>
    %c0_61 = arith.constant 0 : index
    %c0_62 = arith.constant 0 : index
    %191 = vector.load %arg5[%c0_61, %c0_62] : memref<1x2xf32, #tpu.memory_space<vmem>>, vector<1x2xf32>
    %192 = vector.broadcast %191 : vector<1x2xf32> to vector<2x2xf32>
    %193 = arith.addf %190, %192 : vector<2x2xf32>
    %c0_63 = arith.constant 0 : index
    %c0_64 = arith.constant 0 : index
    %194 = vector.load %arg6[%c0_63, %c0_64] : memref<2x2xf32, #tpu.memory_space<vmem>>, vector<2x2xf32>
    tpu.vector_store %arg6[%c0_63, %c0_64], %193 {strides = array<i32>} : memref<2x2xf32, #tpu.memory_space<vmem>>, vector<2x2xf32>,
    return
  }
}

</mosaic_0001>

<bundles_post_ra>
// kernel: lstm_model_forward.1
= control target key start
LH: loop header
LB: loop body
LE: loop exit
PB: predicated region body
PF: predicated region fallthrough
CT: control target
= control target key end

     0   :  { %v2688_v1 = vmov 0   ;;  %s3233_s0 = inlined_call_operand.vmem [shape: f32[2,8,1], index: 0, kind: input, shape index: {}]   ;;  %s3234_s1 = inlined_call_operand.vmem [shape: f32[1,512], index: 1, kind: input, shape index: {}]   ;;  %s3235_s2 = inlined_call_operand.hbm [shape: f32[128,512], index: 2, kind: input, shape index: {}]   ;;  %s3236_s3 = inlined_call_operand.vmem [shape: f32[1,512], index: 3, kind: input, shape index: {}]   ;;  %s3237_s4 = inlined_call_operand.vmem [shape: f32[128,2], index: 4, kind: input, shape index: {}]   ;;  %s3238_s5 = inlined_call_operand.vmem [shape: f32[1,2], index: 5, kind: input, shape index: {}]   ;;  %s3239_s6 = inlined_call_operand.hbm [shape: f32[2,2], index: 6, kind: output, shape index: {}]  }
   0x1   :  { %v35_v0 = vld [vmem:[%s3233_s0] sm:$0xff]  ;;  %2539 = vset.pattern.permute.xlu0 %v2688_v1 }
   0x2   :  { %11 = vsyncpa [#allocation6], 0  ;;  %39 = vperm.xlu0 %2539, %v35_v0   ;;  %v36_v2 = vld [vmem:[%s3233_s0 + $0x8] sm:$0xff]  ;;  %s2689_s25 = smov [#allocation3]   ;;  %s2640_s29 = scalar_lea.hbm %s3235_s2, 8192 }
   0x3   :  { %s29_s26 = sshll.u32 %s2689_s25, 4  ;;  %p2641_p0 = scmp.ne.s32.totalorder %s3235_s2, %s2640_s29  ;;  %s30_s26 = int_to_ptr.vmem [resolvable:$true] %s29_s26 }
   0x4   :  { %p2644_p1 = scmp.lt.u32.totalorder %s2640_s29, %s3235_s2 }
   0x6   :  { %44 = vperm.xlu0 %2539, %v36_v2   ;;  %p2646_p2 = pnand %p2644_p1, %p2641_p0 }
   0x8   :  { %2649 = shalt.err (!%p2646_p2)  }
   0x9   :  { %s2650_s10 = scalar_lea.vmem %s30_s26, 8192  ;;  %p2655_p4 = scmp.lt.s32.totalorder %s30_s26, %s30_s26 }
   0xa   :  { %p2651_p3 = scmp.ne.s32.totalorder %s30_s26, %s2650_s10  ;;  %p2656_p5 = scmp.lt.s32.totalorder %s2650_s10, %s2650_s10 }
   0xc   :  { %p2657_p6 = por %p2656_p5, %p2655_p4 }
   0xe   :  { %p2658_p7 = pnand %p2657_p6, %p2651_p3 }
  0x10   :  { %2661 = shalt.err (!%p2658_p7)  }
  0x11   :  { %32 = dma.hbm_to_vmem [thread:$0]  %s3235_s2, 8192, %s30_s26, [#allocation4]  ;;  %v48_v3 = vlaneseq  ;;  %v33_v9 = vld [vmem:[%s3234_s1] sm:$0xf] }
  0x12   :  { %v34_v10 = vld [vmem:[%s3236_s3] sm:$0xf] }
  0x13   :  { %v2748_v4 = vshrl.u32 %v48_v3, 7 }
  0x15   :  { %v50_v5 = vsub.s32 0, %v2748_v4  ;;  %v54_v6 = vsub.s32 1, %v2748_v4  ;;  %v58_v7 = vsub.s32 2, %v2748_v4  ;;  %v62_v8 = vsub.s32 3, %v2748_v4 }
  0x17   :  { %v51_v11 = vrot.slane %v33_v9, %v50_v5  ;;  %v55_v12 = vrot.slane %v33_v9, %v54_v6  ;;  %v59_v13 = vrot.slane %v33_v9, %v58_v7  ;;  %v63_v14 = vrot.slane %v33_v9, %v62_v8 }
  0x18   :  { %v80_v15 = vrot.slane %v34_v10, %v50_v5  ;;  %v84_v16 = vrot.slane %v34_v10, %v54_v6  ;;  %v88_v17 = vrot.slane %v34_v10, %v58_v7  ;;  %v92_v18 = vrot.slane %v34_v10, %v62_v8 }
  0x81   :  { %v40_v19 = vpop.permute.xlu0 %39 }
  0x82   :  { %v68_v20 = vmul.f32 %v51_v11, %v40_v19  ;;  %v69_v21 = vmul.f32 %v55_v12, %v40_v19  ;;  %v70_v22 = vmul.f32 %v59_v13, %v40_v19  ;;  %v71_v23 = vmul.f32 %v63_v14, %v40_v19 }
  0x84   :  { %v97_v24 = vadd.f32 %v80_v15, %v68_v20  ;;  %v98_v25 = vadd.f32 %v84_v16, %v69_v21  ;;  %v99_v26 = vadd.f32 %v88_v17, %v70_v22  ;;  %v100_v27 = vadd.f32 %v92_v18, %v71_v23 }
  0x85   :  { %v45_v28 = vpop.permute.xlu0 %44 }
  0x86   :  { %v72_v29 = vmul.f32 %v51_v11, %v45_v28  ;;  %v73_v30 = vmul.f32 %v55_v12, %v45_v28  ;;  %v74_v31 = vmul.f32 %v59_v13, %v45_v28  ;;  %v75_v32 = vmul.f32 %v63_v14, %v45_v28  ;;  %105 = vst [vmem:[#allocation2] sm:$0xff] %v97_v24 }
  0x87   :  { %106 = vst [vmem:[#allocation2 + $0x8] sm:$0xff] %v98_v25  ;;  %107 = vst [vmem:[#allocation2 + $0x10] sm:$0xff] %v99_v26  ;;  %v113_v33 = vmul.f32 0.5, %v97_v24  ;;  %v121_v39 = vmul.f32 0.5, %v99_v26 }
  0x88   :  { %108 = vst [vmem:[#allocation2 + $0x18] sm:$0xff] %v100_v27  ;;  %v101_v34 = vadd.f32 %v80_v15, %v72_v29  ;;  %v102_v35 = vadd.f32 %v84_v16, %v73_v30  ;;  %v103_v36 = vadd.f32 %v88_v17, %v74_v31  ;;  %v104_v37 = vadd.f32 %v92_v18, %v75_v32 }
  0x89   :  { %2540 = vtanh.f32 %v113_v33 }
  0x8a   :  { %109 = vst [vmem:[#allocation2 + $0x20] sm:$0xff] %v101_v34  ;;  %110 = vst [vmem:[#allocation2 + $0x28] sm:$0xff] %v102_v35  ;;  %v114_v38 = vmul.f32 0.5, %v101_v34  ;;  %v122_v40 = vmul.f32 0.5, %v103_v36 }
  0x8b   :  { %111 = vst [vmem:[#allocation2 + $0x30] sm:$0xff] %v103_v36  ;;  %112 = vst [vmem:[#allocation2 + $0x38] sm:$0xff] %v104_v37 }
  0x8c   :  { %2542 = vtanh.f32 %v114_v38 }
  0x8d   :  { %2544 = vtanh.f32 %v100_v27 }
  0x8e   :  { %2546 = vtanh.f32 %v104_v37 }
  0x8f   :  { %2548 = vtanh.f32 %v121_v39 }
  0x90   :  { %2550 = vtanh.f32 %v122_v40 }
  0x93   :  { %v2541_v41 = vpop.eup %2540 }
  0x94   :  { %v117_v42 = vmul.f32 0.5, %v2541_v41 }
  0x96   :  { %v2543_v43 = vpop.eup %2542  ;;  %v119_v44 = vadd.f32 0.5, %v117_v42 }
  0x97   :  { %v2545_v45 = vpop.eup %2544  ;;  %v118_v46 = vmul.f32 0.5, %v2543_v43 }
  0x98   :  { %v2760_v47 = vmul.f32 %v2545_v45, %v119_v44  ;;  %v2547_v49 = vpop.eup %2546 }
  0x99   :  { %v120_v48 = vadd.f32 0.5, %v118_v46  ;;  %v2549_v51 = vpop.eup %2548 }
  0x9a   :  { %2552 = vtanh.f32 %v2760_v47  ;;  %v2551_v52 = vpop.eup %2550  ;;  %v125_v53 = vmul.f32 0.5, %v2549_v51 }
  0x9b   :  { %v2763_v50 = vmul.f32 %v2547_v49, %v120_v48  ;;  %v126_v54 = vmul.f32 0.5, %v2551_v52 }
  0x9c   :  { %v127_v55 = vadd.f32 0.5, %v125_v53 }
  0x9d   :  { %2554 = vtanh.f32 %v2763_v50  ;;  %v128_v58 = vadd.f32 0.5, %v126_v54 }
  0xa4   :  { %v2553_v56 = vpop.eup %2552 }
  0xa5   :  { %v2766_v57 = vmul.f32 %v2553_v56, %v127_v55 }
  0xa7   :  { %v2555_v59 = vpop.eup %2554 }
  0xa8   :  { %v2768_v60 = vmul.f32 %v2555_v59, %v128_v58 }
  0xa9   :  { %2684 = dma.done.wait [#allocation4], 8192 }
  0xaa   :  { %2685 = vsyncadd [#allocation4], 4294959104  ;;  %v2690_v61 = vmov 0.0   ;;  %v142_v62 = vld [vmem:[#allocation3 + $0x8] sm:$0xff]  ;;  %v144_v0 = vld [vmem:[#allocation3 + $0x18] sm:$0xff]  ;;  %vm212_vm0 = vcmask 1041409  }
  0xab   :  { %279 = vmatprep.mubr.f32.mxu0 %v2690_v61  ;;  %350 = vmatprep.mubr.f32.mxu1 %v2690_v61  ;;  %v146_v63 = vld [vmem:[#allocation3 + $0x28] sm:$0xff]  ;;  %v148_v2 = vld [vmem:[#allocation3 + $0x38] sm:$0xff]  ;;  %v141_v3 = vld [vmem:[#allocation3] sm:$0xff]  ;;  %vm2693_vm1 = vmmov 0   ;;  %s2694_s18 = smov [#allocation5]   ;;  %vm1984_vm2 = vcmask 9216  }
  0xac   :  { %v2772_v1 = vpack.c.bf16 %v146_v63, %v142_v62  ;;  %v145_v5 = vld [vmem:[#allocation3 + $0x20] sm:$0xff]  ;;  %v2774_v6 = vpack.c.bf16 %v148_v2, %v144_v0  ;;  %v143_v8 = vld [vmem:[#allocation3 + $0x10] sm:$0xff]  ;;  %v150_v10 = vld [vmem:[#allocation3 + $0x48] sm:$0xff]  ;;  %s1992_s19 = sshll.u32 %s2694_s18, 4  ;;  %s1993_s19 = int_to_ptr.vmem [resolvable:$true] %s1992_s19 }
  0xad   :  { %v2776_v7 = vpack.c.bf16 %v145_v5, %v141_v3  ;;  %v147_v9 = vld [vmem:[#allocation3 + $0x30] sm:$0xff]  ;;  %v154_v12 = vld [vmem:[#allocation3 + $0x68] sm:$0xff]  ;;  %v152_v13 = vld [vmem:[#allocation3 + $0x58] sm:$0xff]  ;;  %s2662_s20 = scalar_lea.vmem %s1993_s19, 32  ;;  %p2667_p9 = scmp.lt.s32.totalorder %s1993_s19, %s1993_s19 }
  0xae   :  { %2061 = vmatprep.subr.bf16.mxu0 %v2772_v1  ;;  %v2779_v11 = vpack.c.bf16 %v147_v9, %v143_v8  ;;  %v156_v14 = vld [vmem:[#allocation3 + $0x78] sm:$0xff]  ;;  %2093 = vmatprep.subr.bf16.mxu1 %v2774_v6  ;;  %v2783_v15 = vpack.c.bf16 %v154_v12, %v150_v10  ;;  %v149_v17 = vld [vmem:[#allocation3 + $0x40] sm:$0xff]  ;;  %v151_v19 = vld [vmem:[#allocation3 + $0x50] sm:$0xff]  ;;  %p2663_p8 = scmp.ne.s32.totalorder %s1993_s19, %s2662_s20  ;;  %p2668_p10 = scmp.lt.s32.totalorder %s2662_s20, %s2662_s20 }
  0xaf   :  { %2063 = vmatpush1.bf16.msra.mxu0 %v2776_v7  ;;  %v2785_v16 = vpack.c.bf16 %v156_v14, %v152_v13  ;;  %v153_v18 = vld [vmem:[#allocation3 + $0x60] sm:$0xff]  ;;  %v155_v21 = vld [vmem:[#allocation3 + $0x70] sm:$0xff]  ;;  %v158_v22 = vld [vmem:[#allocation3 + $0x88] sm:$0xff] }
  0xb0   :  { %2095 = vmatpush1.bf16.msra.mxu1 %v2779_v11  ;;  %v2788_v20 = vpack.c.bf16 %v153_v18, %v149_v17  ;;  %v162_v23 = vld [vmem:[#allocation3 + $0xa8] sm:$0xff]  ;;  %2065 = vmatprep.subr.bf16.mxu0 %v2783_v15  ;;  %v2792_v24 = vpack.c.bf16 %v155_v21, %v151_v19  ;;  %v160_v26 = vld [vmem:[#allocation3 + $0x98] sm:$0xff]  ;;  %v157_v28 = vld [vmem:[#allocation3 + $0x80] sm:$0xff]  ;;  %p2669_p11 = por %p2668_p10, %p2667_p9 }
  0xb1   :  { %2097 = vmatprep.subr.bf16.mxu1 %v2785_v16  ;;  %v2794_v25 = vpack.c.bf16 %v162_v23, %v158_v22  ;;  %v164_v27 = vld [vmem:[#allocation3 + $0xb8] sm:$0xff]  ;;  %v161_v30 = vld [vmem:[#allocation3 + $0xa0] sm:$0xff]  ;;  %v159_v31 = vld [vmem:[#allocation3 + $0x90] sm:$0xff] }
  0xb2   :  { %v2796_v29 = vpack.c.bf16 %v164_v27, %v160_v26  ;;  %v163_v32 = vld [vmem:[#allocation3 + $0xb0] sm:$0xff]  ;;  %v2799_v33 = vpack.c.bf16 %v161_v30, %v157_v28  ;;  %v166_v34 = vld [vmem:[#allocation3 + $0xc8] sm:$0xff]  ;;  %v168_v36 = vld [vmem:[#allocation3 + $0xd8] sm:$0xff]  ;;  %p2670_p12 = pnand %p2669_p11, %p2663_p8 }
  0xb3   :  { %2067 = vmatpush1.bf16.msra.mxu0 %v2788_v20  ;;  %v170_v35 = vld [vmem:[#allocation3 + $0xe8] sm:$0xff]  ;;  %v2803_v37 = vpack.c.bf16 %v163_v32, %v159_v31  ;;  %v172_v39 = vld [vmem:[#allocation3 + $0xf8] sm:$0xff]  ;;  %v165_v40 = vld [vmem:[#allocation3 + $0xc0] sm:$0xff] }
  0xb4   :  { %2099 = vmatpush1.bf16.msra.mxu1 %v2792_v24  ;;  %2069 = vmatprep.subr.bf16.mxu0 %v2794_v25  ;;  %v2805_v38 = vpack.c.bf16 %v170_v35, %v166_v34  ;;  %v169_v41 = vld [vmem:[#allocation3 + $0xe0] sm:$0xff]  ;;  %v2808_v42 = vpack.c.bf16 %v172_v39, %v168_v36  ;;  %v167_v43 = vld [vmem:[#allocation3 + $0xd0] sm:$0xff]  ;;  %v174_v45 = vld [vmem:[#allocation3 + $0x108] sm:$0xff] }
  0xb5   :  { %2101 = vmatprep.subr.bf16.mxu1 %v2796_v29  ;;  %v171_v44 = vld [vmem:[#allocation3 + $0xf0] sm:$0xff]  ;;  %v178_v46 = vld [vmem:[#allocation3 + $0x128] sm:$0xff]  ;;  %v176_v48 = vld [vmem:[#allocation3 + $0x118] sm:$0xff]  ;;  %v2811_v51 = vpack.c.bf16 %v169_v41, %v165_v40 }
  0xb6   :  { %v180_v49 = vld [vmem:[#allocation3 + $0x138] sm:$0xff]  ;;  %v2815_v52 = vpack.c.bf16 %v171_v44, %v167_v43  ;;  %v2817_v53 = vpack.c.bf16 %v178_v46, %v174_v45  ;;  %v173_v54 = vld [vmem:[#allocation3 + $0x100] sm:$0xff]  ;;  %v175_v56 = vld [vmem:[#allocation3 + $0x110] sm:$0xff] }
  0xb7   :  { %2071 = vmatpush1.bf16.msra.mxu0 %v2799_v33  ;;  %v177_v55 = vld [vmem:[#allocation3 + $0x120] sm:$0xff]  ;;  %v2820_v58 = vpack.c.bf16 %v180_v49, %v176_v48  ;;  %v179_v59 = vld [vmem:[#allocation3 + $0x130] sm:$0xff]  ;;  %v182_v62 = vld [vmem:[#allocation3 + $0x148] sm:$0xff] }
  0xb8   :  { %2103 = vmatpush1.bf16.msra.mxu1 %v2803_v37  ;;  %2073 = vmatprep.subr.bf16.mxu0 %v2805_v38  ;;  %v186_v63 = vld [vmem:[#allocation3 + $0x168] sm:$0xff]  ;;  %v184_v0 = vld [vmem:[#allocation3 + $0x158] sm:$0xff]  ;;  %v2823_v3 = vpack.c.bf16 %v177_v55, %v173_v54  ;;  %v2827_v5 = vpack.c.bf16 %v179_v59, %v175_v56  ;;  %v181_v9 = vld [vmem:[#allocation3 + $0x140] sm:$0xff]  ;;  %v211_v55 = vrot.slane %v2768_v60, 7 }
  0xb9   :  { %2105 = vmatprep.subr.bf16.mxu1 %v2808_v42  ;;  %v188_v2 = vld [vmem:[#allocation3 + $0x178] sm:$0xff]  ;;  %v2829_v8 = vpack.c.bf16 %v186_v63, %v182_v62  ;;  %v185_v10 = vld [vmem:[#allocation3 + $0x160] sm:$0xff]  ;;  %v183_v12 = vld [vmem:[#allocation3 + $0x150] sm:$0xff] }
  0xba   :  { %v2832_v13 = vpack.c.bf16 %v188_v2, %v184_v0  ;;  %v187_v14 = vld [vmem:[#allocation3 + $0x170] sm:$0xff]  ;;  %v190_v17 = vld [vmem:[#allocation3 + $0x188] sm:$0xff]  ;;  %v192_v19 = vld [vmem:[#allocation3 + $0x198] sm:$0xff]  ;;  %v2835_v22 = vpack.c.bf16 %v185_v10, %v181_v9  ;;  %v213_v59 = vsel %vm212_vm0, %v211_v55, %v2766_v57  ;;  %v2691_v57 = vmov 1966171168  }
  0xbb   :  { %2075 = vmatpush1.bf16.msra.mxu0 %v2811_v51  ;;  %v194_v18 = vld [vmem:[#allocation3 + $0x1a8] sm:$0xff]  ;;  %v196_v21 = vld [vmem:[#allocation3 + $0x1b8] sm:$0xff]  ;;  %v2839_v23 = vpack.c.bf16 %v187_v14, %v183_v12  ;;  %v189_v27 = vld [vmem:[#allocation3 + $0x180] sm:$0xff]  ;;  %v364_v60 = vunpack.c.l.s4 %v2691_v57 }
  0xbc   :  { %2107 = vmatpush1.bf16.msra.mxu1 %v2815_v52  ;;  %2077 = vmatprep.subr.bf16.mxu0 %v2817_v53  ;;  %v2841_v26 = vpack.c.bf16 %v194_v18, %v190_v17  ;;  %v193_v28 = vld [vmem:[#allocation3 + $0x1a0] sm:$0xff]  ;;  %v191_v30 = vld [vmem:[#allocation3 + $0x190] sm:$0xff]  ;;  %v2844_v31 = vpack.c.bf16 %v196_v21, %v192_v19  ;;  %v198_v34 = vld [vmem:[#allocation3 + $0x1c8] sm:$0xff] }
  0xbd   :  { %2109 = vmatprep.subr.bf16.mxu1 %v2820_v58  ;;  %v195_v32 = vld [vmem:[#allocation3 + $0x1b0] sm:$0xff]  ;;  %v202_v35 = vld [vmem:[#allocation3 + $0x1e8] sm:$0xff]  ;;  %v200_v36 = vld [vmem:[#allocation3 + $0x1d8] sm:$0xff]  ;;  %v2847_v40 = vpack.c.bf16 %v193_v28, %v189_v27  ;;  %v365_v62 = vunpack.c.0.s8 %v364_v60 }
  0xbe   :  { %v204_v39 = vld [vmem:[#allocation3 + $0x1f8] sm:$0xff]  ;;  %v2851_v41 = vpack.c.bf16 %v195_v32, %v191_v30  ;;  %v2853_v43 = vpack.c.bf16 %v202_v35, %v198_v34  ;;  %v197_v44 = vld [vmem:[#allocation3 + $0x1c0] sm:$0xff]  ;;  %v199_v48 = vld [vmem:[#allocation3 + $0x1d0] sm:$0xff] }
  0xbf   :  { %2079 = vmatpush1.bf16.msra.mxu0 %v2823_v3  ;;  %v201_v45 = vld [vmem:[#allocation3 + $0x1e0] sm:$0xff]  ;;  %v2856_v46 = vpack.c.bf16 %v204_v39, %v200_v36  ;;  %v203_v49 = vld [vmem:[#allocation3 + $0x1f0] sm:$0xff]  ;;  %v2907_v0 = vsub.s32 %v365_v62, %v2748_v4 }
  0xc0   :  { %2111 = vmatpush1.bf16.msra.mxu1 %v2827_v5  ;;  %2081 = vmatprep.subr.bf16.mxu0 %v2829_v8  ;;  %v2859_v54 = vpack.c.bf16 %v201_v45, %v197_v44  ;;  %v2864_v56 = vpack.c.bf16 %v203_v49, %v199_v48  ;;  %v206_v27 = vld [vmem:[#allocation2 + $0x1] ss:$8 sm:$0xf] }
  0xc1   :  { %2113 = vmatprep.subr.bf16.mxu1 %v2832_v13  ;;  %v208_v28 = vld [vmem:[#allocation2 + $0x21] ss:$8 sm:$0xf] }
  0xc3   :  { %2083 = vmatpush1.bf16.msra.mxu0 %v2835_v22 }
  0xc4   :  { %2115 = vmatpush1.bf16.msra.mxu1 %v2839_v23  ;;  %2085 = vmatprep.subr.bf16.mxu0 %v2841_v26 }
  0xc5   :  { %2117 = vmatprep.subr.bf16.mxu1 %v2844_v31 }
  0xc7   :  { %2087 = vmatpush1.bf16.msra.mxu0 %v2847_v40 }
  0xc8   :  { %2119 = vmatpush1.bf16.msra.mxu1 %v2851_v41  ;;  %2089 = vmatprep.subr.bf16.mxu0 %v2853_v43 }
  0xc9   :  { %2121 = vmatprep.subr.bf16.mxu1 %v2856_v46 }
  0xcb   :  { %2091 = vmatpush1.bf16.msra.mxu0 %v2859_v54 }
  0xcc   :  { %2123 = vmatpush1.bf16.msra.mxu1 %v2864_v56  ;;  %2125 = vmatprep.subr.bf16.mxu0 %v2772_v1 }
  0xcd   :  { %2157 = vmatprep.subr.bf16.mxu1 %v2774_v6 }
  0xce   :  { %280 = vmatmul.mubr.f32.vlgmr.msra.gmra.mrb[0].mxu0 %v213_v59 }
  0xcf   :  { %351 = vmatmul.mubr.f32.vlgmr.msra.gmra.mrb[0].mxu1 %v213_v59  ;;  %2127 = vmatpush1.bf16.msra.mxu0 %v2776_v7 }
  0xd0   :  { %2159 = vmatpush1.bf16.msra.mxu1 %v2779_v11  ;;  %2129 = vmatprep.subr.bf16.mxu0 %v2783_v15 }
  0xd1   :  { %2161 = vmatprep.subr.bf16.mxu1 %v2785_v16  ;;  %519 = vmatprep.mubr.f32.mxu0 %v2690_v61 }
  0xd2   :  { %590 = vmatprep.mubr.f32.mxu1 %v2690_v61 }
  0xd3   :  { %2131 = vmatpush1.bf16.msra.mxu0 %v2788_v20 }
  0xd4   :  { %2163 = vmatpush1.bf16.msra.mxu1 %v2792_v24  ;;  %2133 = vmatprep.subr.bf16.mxu0 %v2794_v25 }
  0xd5   :  { %2165 = vmatprep.subr.bf16.mxu1 %v2796_v29 }
  0xd7   :  { %2135 = vmatpush1.bf16.msra.mxu0 %v2799_v33 }
  0xd8   :  { %2167 = vmatpush1.bf16.msra.mxu1 %v2803_v37  ;;  %2137 = vmatprep.subr.bf16.mxu0 %v2805_v38 }
  0xd9   :  { %2169 = vmatprep.subr.bf16.mxu1 %v2808_v42 }
  0xdb   :  { %2139 = vmatpush1.bf16.msra.mxu0 %v2811_v51 }
  0xdc   :  { %2171 = vmatpush1.bf16.msra.mxu1 %v2815_v52  ;;  %2141 = vmatprep.subr.bf16.mxu0 %v2817_v53 }
  0xdd   :  { %2173 = vmatprep.subr.bf16.mxu1 %v2820_v58 }
  0xdf   :  { %2143 = vmatpush1.bf16.msra.mxu0 %v2823_v3 }
  0xe0   :  { %2175 = vmatpush1.bf16.msra.mxu1 %v2827_v5  ;;  %2145 = vmatprep.subr.bf16.mxu0 %v2829_v8 }
  0xe1   :  { %2177 = vmatprep.subr.bf16.mxu1 %v2832_v13 }
  0xe3   :  { %2147 = vmatpush1.bf16.msra.mxu0 %v2835_v22 }
  0xe4   :  { %2179 = vmatpush1.bf16.msra.mxu1 %v2839_v23  ;;  %2149 = vmatprep.subr.bf16.mxu0 %v2841_v26 }
  0xe5   :  { %2181 = vmatprep.subr.bf16.mxu1 %v2844_v31 }
  0xe7   :  { %2151 = vmatpush1.bf16.msra.mxu0 %v2847_v40 }
  0xe8   :  { %2183 = vmatpush1.bf16.msra.mxu1 %v2851_v41  ;;  %2153 = vmatprep.subr.bf16.mxu0 %v2853_v43 }
  0xe9   :  { %2185 = vmatprep.subr.bf16.mxu1 %v2856_v46 }
  0xeb   :  { %2155 = vmatpush1.bf16.msra.mxu0 %v2859_v54 }
  0xec   :  { %2187 = vmatpush1.bf16.msra.mxu1 %v2864_v56  ;;  %2189 = vmatprep.subr.bf16.mxu0 %v2772_v1 }
  0xed   :  { %2221 = vmatprep.subr.bf16.mxu1 %v2774_v6 }
 0x1a1   :  { %v281_v63 = vpop.f32.mrb[0].mxu0 }
 0x1a2   :  { %v352_v2 = vpop.f32.mrb[0].mxu1  ;;  %v283_v9 = vpop.f32.mrb[1].mxu0 }
 0x1a3   :  { %v361_v10 = vcombine.low %v281_v63, %v283_v9  ;;  %v354_v12 = vpop.f32.mrb[1].mxu1 }
 0x1a4   :  { %v362_v14 = vcombine.low %v352_v2, %v354_v12 }
 0x1a5   :  { %v369_v17 = vrot.slane %v361_v10, %v2907_v0 }
 0x1a6   :  { %v376_v18 = vrot.slane %v362_v14, %v2907_v0 }
 0x1a8   :  { %v377_v19 = vcombine.low %v369_v17, %v376_v18  ;;  %v378_v21 = vcombine.high %v369_v17, %v376_v18 }
 0x1aa   :  { %v385_v30 = vrot.slane %v377_v19, %v2907_v0  ;;  %v392_v32 = vrot.slane %v378_v21, %v2907_v0 }
 0x1ac   :  { %v395_v34 = vadd.f32 %v385_v30, %v206_v27  ;;  %v396_v4 = vadd.f32 %v392_v32, %v208_v28 }
 0x1ae   :  { %v397_v35 = vmul.f32 0.5, %v395_v34  ;;  %v398_v36 = vmul.f32 0.5, %v396_v4  ;;  %v407_v39 = vrot.slane %v395_v34, 3  ;;  %v408_v44 = vrot.slane %v396_v4, 3 }
 0x1b0   :  { %2556 = vtanh.f32 %v397_v35 }
 0x1b1   :  { %2558 = vtanh.f32 %v398_v36 }
 0x1b2   :  { %2560 = vtanh.f32 %v407_v39 }
 0x1b3   :  { %2562 = vtanh.f32 %v408_v44 }
 0x1ba   :  { %v2557_v45 = vpop.eup %2556 }
 0x1bb   :  { %v2559_v48 = vpop.eup %2558  ;;  %v401_v49 = vmul.f32 0.5, %v2557_v45 }
 0x1bc   :  { %v402_v55 = vmul.f32 0.5, %v2559_v48  ;;  %v2561_v62 = vpop.eup %2560 }
 0x1bd   :  { %v403_v59 = vadd.f32 0.5, %v401_v49  ;;  %v2563_v2 = vpop.eup %2562 }
 0x1be   :  { %v404_v57 = vadd.f32 0.5, %v402_v55 }
 0x1bf   :  { %v415_v60 = vrot.slane %v403_v59, 1  ;;  %v421_v10 = vmul.f32 %v2561_v62, %v403_v59  ;;  %v427_v19 = vrot.slane %v403_v59, 2 }
 0x1c0   :  { %v416_v63 = vrot.slane %v404_v57, 1  ;;  %v422_v14 = vmul.f32 %v2563_v2, %v404_v57  ;;  %v428_v27 = vrot.slane %v404_v57, 2  ;;  %v434_v57 = vld [vmem:[#allocation2 + $0x2] ss:$8 sm:$0xf] }
 0x1c1   :  { %v419_v9 = vmul.f32 %v415_v60, %v2760_v47  ;;  %v436_v60 = vld [vmem:[#allocation2 + $0x22] ss:$8 sm:$0xf] }
 0x1c2   :  { %v420_v12 = vmul.f32 %v416_v63, %v2763_v50 }
 0x1c3   :  { %v2915_v17 = vadd.f32 %v421_v10, %v419_v9 }
 0x1c4   :  { %v2917_v18 = vadd.f32 %v422_v14, %v420_v12 }
 0x1c5   :  { %2564 = vtanh.f32 %v2915_v17 }
 0x1c6   :  { %2566 = vtanh.f32 %v2917_v18 }
 0x1cf   :  { %v2565_v21 = vpop.eup %2564 }
 0x1d0   :  { %v2567_v28 = vpop.eup %2566  ;;  %v431_v30 = vmul.f32 %v2565_v21, %v427_v19 }
 0x1d1   :  { %v432_v32 = vmul.f32 %v2567_v28, %v428_v27 }
 0x1d3   :  { %v439_v34 = vcombine.low %v431_v30, %v432_v32 }
 0x1d5   :  { %v446_v47 = vrot.slane %v439_v34, %v2907_v0 }
 0x1d7   :  { %v453_v50 = vrot.slane %v446_v47, %v2907_v0 }
 0x1d9   :  { %520 = vmatmul.mubr.f32.vlgmr.msra.gmra.mrb[2].mxu0 %v453_v50  ;;  %591 = vmatmul.mubr.f32.vlgmr.msra.gmra.mrb[2].mxu1 %v453_v50 }
 0x1da   :  { %2191 = vmatpush1.bf16.msra.mxu0 %v2776_v7  ;;  %2223 = vmatpush1.bf16.msra.mxu1 %v2779_v11 }
 0x1db   :  { %2193 = vmatprep.subr.bf16.mxu0 %v2783_v15  ;;  %2225 = vmatprep.subr.bf16.mxu1 %v2785_v16 }
 0x1dc   :  { %759 = vmatprep.mubr.f32.mxu0 %v2690_v61  ;;  %830 = vmatprep.mubr.f32.mxu1 %v2690_v61 }
 0x1de   :  { %2195 = vmatpush1.bf16.msra.mxu0 %v2788_v20  ;;  %2227 = vmatpush1.bf16.msra.mxu1 %v2792_v24 }
 0x1df   :  { %2197 = vmatprep.subr.bf16.mxu0 %v2794_v25  ;;  %2229 = vmatprep.subr.bf16.mxu1 %v2796_v29 }
 0x1e2   :  { %2199 = vmatpush1.bf16.msra.mxu0 %v2799_v33  ;;  %2231 = vmatpush1.bf16.msra.mxu1 %v2803_v37 }
 0x1e3   :  { %2201 = vmatprep.subr.bf16.mxu0 %v2805_v38  ;;  %2233 = vmatprep.subr.bf16.mxu1 %v2808_v42 }
 0x1e6   :  { %2203 = vmatpush1.bf16.msra.mxu0 %v2811_v51  ;;  %2235 = vmatpush1.bf16.msra.mxu1 %v2815_v52 }
 0x1e7   :  { %2205 = vmatprep.subr.bf16.mxu0 %v2817_v53  ;;  %2237 = vmatprep.subr.bf16.mxu1 %v2820_v58 }
 0x1ea   :  { %2207 = vmatpush1.bf16.msra.mxu0 %v2823_v3  ;;  %2239 = vmatpush1.bf16.msra.mxu1 %v2827_v5 }
 0x1eb   :  { %2209 = vmatprep.subr.bf16.mxu0 %v2829_v8  ;;  %2241 = vmatprep.subr.bf16.mxu1 %v2832_v13 }
 0x1ee   :  { %2211 = vmatpush1.bf16.msra.mxu0 %v2835_v22  ;;  %2243 = vmatpush1.bf16.msra.mxu1 %v2839_v23 }
 0x1ef   :  { %2213 = vmatprep.subr.bf16.mxu0 %v2841_v26  ;;  %2245 = vmatprep.subr.bf16.mxu1 %v2844_v31 }
 0x1f2   :  { %2215 = vmatpush1.bf16.msra.mxu0 %v2847_v40  ;;  %2247 = vmatpush1.bf16.msra.mxu1 %v2851_v41 }
 0x1f3   :  { %2217 = vmatprep.subr.bf16.mxu0 %v2853_v43  ;;  %2249 = vmatprep.subr.bf16.mxu1 %v2856_v46 }
 0x1f6   :  { %2219 = vmatpush1.bf16.msra.mxu0 %v2859_v54  ;;  %2251 = vmatpush1.bf16.msra.mxu1 %v2864_v56 }
 0x1f7   :  { %2253 = vmatprep.subr.bf16.mxu0 %v2772_v1  ;;  %2285 = vmatprep.subr.bf16.mxu1 %v2774_v6 }
 0x2ac   :  { %v521_v4 = vpop.f32.mrb[2].mxu0  ;;  %v592_v35 = vpop.f32.mrb[2].mxu1 }
 0x2ad   :  { %v523_v36 = vpop.f32.mrb[3].mxu0  ;;  %v594_v39 = vpop.f32.mrb[3].mxu1 }
 0x2ae   :  { %v601_v44 = vcombine.low %v521_v4, %v523_v36  ;;  %v602_v45 = vcombine.low %v592_v35, %v594_v39 }
 0x2b0   :  { %v609_v48 = vrot.slane %v601_v44, %v2907_v0  ;;  %v616_v49 = vrot.slane %v602_v45, %v2907_v0 }
 0x2b2   :  { %v617_v55 = vcombine.low %v609_v48, %v616_v49  ;;  %v618_v59 = vcombine.high %v609_v48, %v616_v49 }
 0x2b4   :  { %v625_v62 = vrot.slane %v617_v55, %v2907_v0  ;;  %v632_v63 = vrot.slane %v618_v59, %v2907_v0 }
 0x2b6   :  { %v635_v2 = vadd.f32 %v625_v62, %v434_v57  ;;  %v636_v9 = vadd.f32 %v632_v63, %v436_v60 }
 0x2b8   :  { %v637_v10 = vmul.f32 0.5, %v635_v2  ;;  %v638_v12 = vmul.f32 0.5, %v636_v9  ;;  %v647_v14 = vrot.slane %v635_v2, 3  ;;  %v648_v19 = vrot.slane %v636_v9, 3 }
 0x2ba   :  { %2568 = vtanh.f32 %v637_v10 }
 0x2bb   :  { %2570 = vtanh.f32 %v638_v12 }
 0x2bc   :  { %2572 = vtanh.f32 %v647_v14 }
 0x2bd   :  { %2574 = vtanh.f32 %v648_v19 }
 0x2c4   :  { %v2569_v21 = vpop.eup %2568 }
 0x2c5   :  { %v2571_v27 = vpop.eup %2570  ;;  %v641_v28 = vmul.f32 0.5, %v2569_v21 }
 0x2c6   :  { %v642_v30 = vmul.f32 0.5, %v2571_v27  ;;  %v2573_v50 = vpop.eup %2572 }
 0x2c7   :  { %v643_v32 = vadd.f32 0.5, %v641_v28  ;;  %v2575_v35 = vpop.eup %2574 }
 0x2c8   :  { %v644_v34 = vadd.f32 0.5, %v642_v30 }
 0x2c9   :  { %v655_v47 = vrot.slane %v643_v32, 1  ;;  %v661_v39 = vmul.f32 %v2573_v50, %v643_v32  ;;  %v667_v55 = vrot.slane %v643_v32, 2 }
 0x2ca   :  { %v656_v4 = vrot.slane %v644_v34, 1  ;;  %v662_v45 = vmul.f32 %v2575_v35, %v644_v34  ;;  %v668_v57 = vrot.slane %v644_v34, 2  ;;  %v674_v34 = vld [vmem:[#allocation2 + $0x3] ss:$8 sm:$0xf] }
 0x2cb   :  { %v659_v36 = vmul.f32 %v655_v47, %v2915_v17  ;;  %v676_v47 = vld [vmem:[#allocation2 + $0x23] ss:$8 sm:$0xf] }
 0x2cc   :  { %v660_v44 = vmul.f32 %v656_v4, %v2917_v18 }
 0x2cd   :  { %v2963_v48 = vadd.f32 %v661_v39, %v659_v36 }
 0x2ce   :  { %v2965_v49 = vadd.f32 %v662_v45, %v660_v44 }
 0x2cf   :  { %2576 = vtanh.f32 %v2963_v48 }
 0x2d0   :  { %2578 = vtanh.f32 %v2965_v49 }
 0x2d9   :  { %v2577_v59 = vpop.eup %2576 }
 0x2da   :  { %v2579_v60 = vpop.eup %2578  ;;  %v671_v62 = vmul.f32 %v2577_v59, %v667_v55 }
 0x2db   :  { %v672_v63 = vmul.f32 %v2579_v60, %v668_v57 }
 0x2dd   :  { %v679_v2 = vcombine.low %v671_v62, %v672_v63 }
 0x2df   :  { %v686_v17 = vrot.slane %v679_v2, %v2907_v0 }
 0x2e1   :  { %v693_v18 = vrot.slane %v686_v17, %v2907_v0 }
 0x2e3   :  { %760 = vmatmul.mubr.f32.vlgmr.msra.gmra.mrb[4].mxu0 %v693_v18  ;;  %831 = vmatmul.mubr.f32.vlgmr.msra.gmra.mrb[4].mxu1 %v693_v18 }
 0x2e4   :  { %2255 = vmatpush1.bf16.msra.mxu0 %v2776_v7  ;;  %2287 = vmatpush1.bf16.msra.mxu1 %v2779_v11 }
 0x2e5   :  { %2257 = vmatprep.subr.bf16.mxu0 %v2783_v15  ;;  %2289 = vmatprep.subr.bf16.mxu1 %v2785_v16 }
 0x2e6   :  { %999 = vmatprep.mubr.f32.mxu0 %v2690_v61  ;;  %1070 = vmatprep.mubr.f32.mxu1 %v2690_v61 }
 0x2e8   :  { %2259 = vmatpush1.bf16.msra.mxu0 %v2788_v20  ;;  %2291 = vmatpush1.bf16.msra.mxu1 %v2792_v24 }
 0x2e9   :  { %2261 = vmatprep.subr.bf16.mxu0 %v2794_v25  ;;  %2293 = vmatprep.subr.bf16.mxu1 %v2796_v29 }
 0x2ec   :  { %2263 = vmatpush1.bf16.msra.mxu0 %v2799_v33  ;;  %2295 = vmatpush1.bf16.msra.mxu1 %v2803_v37 }
 0x2ed   :  { %2265 = vmatprep.subr.bf16.mxu0 %v2805_v38  ;;  %2297 = vmatprep.subr.bf16.mxu1 %v2808_v42 }
 0x2f0   :  { %2267 = vmatpush1.bf16.msra.mxu0 %v2811_v51  ;;  %2299 = vmatpush1.bf16.msra.mxu1 %v2815_v52 }
 0x2f1   :  { %2269 = vmatprep.subr.bf16.mxu0 %v2817_v53  ;;  %2301 = vmatprep.subr.bf16.mxu1 %v2820_v58 }
 0x2f4   :  { %2271 = vmatpush1.bf16.msra.mxu0 %v2823_v3  ;;  %2303 = vmatpush1.bf16.msra.mxu1 %v2827_v5 }
 0x2f5   :  { %2273 = vmatprep.subr.bf16.mxu0 %v2829_v8  ;;  %2305 = vmatprep.subr.bf16.mxu1 %v2832_v13 }
 0x2f8   :  { %2275 = vmatpush1.bf16.msra.mxu0 %v2835_v22  ;;  %2307 = vmatpush1.bf16.msra.mxu1 %v2839_v23 }
 0x2f9   :  { %2277 = vmatprep.subr.bf16.mxu0 %v2841_v26  ;;  %2309 = vmatprep.subr.bf16.mxu1 %v2844_v31 }
 0x2fc   :  { %2279 = vmatpush1.bf16.msra.mxu0 %v2847_v40  ;;  %2311 = vmatpush1.bf16.msra.mxu1 %v2851_v41 }
 0x2fd   :  { %2281 = vmatprep.subr.bf16.mxu0 %v2853_v43  ;;  %2313 = vmatprep.subr.bf16.mxu1 %v2856_v46 }
 0x300   :  { %2283 = vmatpush1.bf16.msra.mxu0 %v2859_v54  ;;  %2315 = vmatpush1.bf16.msra.mxu1 %v2864_v56 }
 0x301   :  { %2317 = vmatprep.subr.bf16.mxu0 %v2772_v1  ;;  %2349 = vmatprep.subr.bf16.mxu1 %v2774_v6 }
 0x3b6   :  { %v761_v9 = vpop.f32.mrb[4].mxu0  ;;  %v832_v10 = vpop.f32.mrb[4].mxu1 }
 0x3b7   :  { %v763_v12 = vpop.f32.mrb[5].mxu0  ;;  %v834_v14 = vpop.f32.mrb[5].mxu1 }
 0x3b8   :  { %v841_v19 = vcombine.low %v761_v9, %v763_v12  ;;  %v842_v21 = vcombine.low %v832_v10, %v834_v14 }
 0x3ba   :  { %v849_v27 = vrot.slane %v841_v19, %v2907_v0  ;;  %v856_v28 = vrot.slane %v842_v21, %v2907_v0 }
 0x3bc   :  { %v857_v30 = vcombine.low %v849_v27, %v856_v28  ;;  %v858_v32 = vcombine.high %v849_v27, %v856_v28 }
 0x3be   :  { %v865_v50 = vrot.slane %v857_v30, %v2907_v0  ;;  %v872_v4 = vrot.slane %v858_v32, %v2907_v0 }
 0x3c0   :  { %v875_v35 = vadd.f32 %v865_v50, %v674_v34  ;;  %v876_v36 = vadd.f32 %v872_v4, %v676_v47 }
 0x3c2   :  { %v877_v39 = vmul.f32 0.5, %v875_v35  ;;  %v878_v44 = vmul.f32 0.5, %v876_v36  ;;  %v887_v45 = vrot.slane %v875_v35, 3  ;;  %v888_v55 = vrot.slane %v876_v36, 3 }
 0x3c4   :  { %2580 = vtanh.f32 %v877_v39 }
 0x3c5   :  { %2582 = vtanh.f32 %v878_v44 }
 0x3c6   :  { %2584 = vtanh.f32 %v887_v45 }
 0x3c7   :  { %2586 = vtanh.f32 %v888_v55 }
 0x3ce   :  { %v2581_v59 = vpop.eup %2580 }
 0x3cf   :  { %v2583_v57 = vpop.eup %2582  ;;  %v881_v60 = vmul.f32 0.5, %v2581_v59 }
 0x3d0   :  { %v882_v62 = vmul.f32 0.5, %v2583_v57  ;;  %v2585_v18 = vpop.eup %2584 }
 0x3d1   :  { %v883_v63 = vadd.f32 0.5, %v881_v60  ;;  %v2587_v10 = vpop.eup %2586 }
 0x3d2   :  { %v884_v2 = vadd.f32 0.5, %v882_v62 }
 0x3d3   :  { %v895_v17 = vrot.slane %v883_v63, 1  ;;  %v901_v14 = vmul.f32 %v2585_v18, %v883_v63  ;;  %v907_v30 = vrot.slane %v883_v63, 2 }
 0x3d4   :  { %v896_v9 = vrot.slane %v884_v2, 1  ;;  %v902_v21 = vmul.f32 %v2587_v10, %v884_v2  ;;  %v908_v34 = vrot.slane %v884_v2, 2  ;;  %v914_v2 = vld [vmem:[#allocation2 + $0x4] ss:$8 sm:$0xf] }
 0x3d5   :  { %v899_v12 = vmul.f32 %v895_v17, %v2963_v48  ;;  %v916_v17 = vld [vmem:[#allocation2 + $0x24] ss:$8 sm:$0xf] }
 0x3d6   :  { %v900_v19 = vmul.f32 %v896_v9, %v2965_v49 }
 0x3d7   :  { %v3011_v27 = vadd.f32 %v901_v14, %v899_v12 }
 0x3d8   :  { %v3013_v28 = vadd.f32 %v902_v21, %v900_v19 }
 0x3d9   :  { %2588 = vtanh.f32 %v3011_v27 }
 0x3da   :  { %2590 = vtanh.f32 %v3013_v28 }
 0x3e3   :  { %v2589_v32 = vpop.eup %2588 }
 0x3e4   :  { %v2591_v47 = vpop.eup %2590  ;;  %v911_v50 = vmul.f32 %v2589_v32, %v907_v30 }
 0x3e5   :  { %v912_v4 = vmul.f32 %v2591_v47, %v908_v34 }
 0x3e7   :  { %v919_v35 = vcombine.low %v911_v50, %v912_v4 }
 0x3e9   :  { %v926_v48 = vrot.slane %v919_v35, %v2907_v0 }
 0x3eb   :  { %v933_v49 = vrot.slane %v926_v48, %v2907_v0 }
 0x3ed   :  { %1000 = vmatmul.mubr.f32.vlgmr.msra.gmra.mrb[6].mxu0 %v933_v49  ;;  %1071 = vmatmul.mubr.f32.vlgmr.msra.gmra.mrb[6].mxu1 %v933_v49 }
 0x3ee   :  { %2319 = vmatpush1.bf16.msra.mxu0 %v2776_v7  ;;  %2351 = vmatpush1.bf16.msra.mxu1 %v2779_v11 }
 0x3ef   :  { %2321 = vmatprep.subr.bf16.mxu0 %v2783_v15  ;;  %2353 = vmatprep.subr.bf16.mxu1 %v2785_v16 }
 0x3f0   :  { %1239 = vmatprep.mubr.f32.mxu0 %v2690_v61  ;;  %1310 = vmatprep.mubr.f32.mxu1 %v2690_v61 }
 0x3f2   :  { %2323 = vmatpush1.bf16.msra.mxu0 %v2788_v20  ;;  %2355 = vmatpush1.bf16.msra.mxu1 %v2792_v24 }
 0x3f3   :  { %2325 = vmatprep.subr.bf16.mxu0 %v2794_v25  ;;  %2357 = vmatprep.subr.bf16.mxu1 %v2796_v29 }
 0x3f6   :  { %2327 = vmatpush1.bf16.msra.mxu0 %v2799_v33  ;;  %2359 = vmatpush1.bf16.msra.mxu1 %v2803_v37 }
 0x3f7   :  { %2329 = vmatprep.subr.bf16.mxu0 %v2805_v38  ;;  %2361 = vmatprep.subr.bf16.mxu1 %v2808_v42 }
 0x3fa   :  { %2331 = vmatpush1.bf16.msra.mxu0 %v2811_v51  ;;  %2363 = vmatpush1.bf16.msra.mxu1 %v2815_v52 }
 0x3fb   :  { %2333 = vmatprep.subr.bf16.mxu0 %v2817_v53  ;;  %2365 = vmatprep.subr.bf16.mxu1 %v2820_v58 }
 0x3fe   :  { %2335 = vmatpush1.bf16.msra.mxu0 %v2823_v3  ;;  %2367 = vmatpush1.bf16.msra.mxu1 %v2827_v5 }
 0x3ff   :  { %2337 = vmatprep.subr.bf16.mxu0 %v2829_v8  ;;  %2369 = vmatprep.subr.bf16.mxu1 %v2832_v13 }
 0x402   :  { %2339 = vmatpush1.bf16.msra.mxu0 %v2835_v22  ;;  %2371 = vmatpush1.bf16.msra.mxu1 %v2839_v23 }
 0x403   :  { %2341 = vmatprep.subr.bf16.mxu0 %v2841_v26  ;;  %2373 = vmatprep.subr.bf16.mxu1 %v2844_v31 }
 0x406   :  { %2343 = vmatpush1.bf16.msra.mxu0 %v2847_v40  ;;  %2375 = vmatpush1.bf16.msra.mxu1 %v2851_v41 }
 0x407   :  { %2345 = vmatprep.subr.bf16.mxu0 %v2853_v43  ;;  %2377 = vmatprep.subr.bf16.mxu1 %v2856_v46 }
 0x40a   :  { %2347 = vmatpush1.bf16.msra.mxu0 %v2859_v54  ;;  %2379 = vmatpush1.bf16.msra.mxu1 %v2864_v56 }
 0x40b   :  { %2381 = vmatprep.subr.bf16.mxu0 %v2772_v1  ;;  %2413 = vmatprep.subr.bf16.mxu1 %v2774_v6 }
 0x4c0   :  { %v1001_v36 = vpop.f32.mrb[6].mxu0  ;;  %v1072_v39 = vpop.f32.mrb[6].mxu1 }
 0x4c1   :  { %v1003_v44 = vpop.f32.mrb[7].mxu0  ;;  %v1074_v45 = vpop.f32.mrb[7].mxu1 }
 0x4c2   :  { %v1081_v55 = vcombine.low %v1001_v36, %v1003_v44  ;;  %v1082_v59 = vcombine.low %v1072_v39, %v1074_v45 }
 0x4c4   :  { %v1089_v57 = vrot.slane %v1081_v55, %v2907_v0  ;;  %v1096_v60 = vrot.slane %v1082_v59, %v2907_v0 }
 0x4c6   :  { %v1097_v62 = vcombine.low %v1089_v57, %v1096_v60  ;;  %v1098_v63 = vcombine.high %v1089_v57, %v1096_v60 }
 0x4c8   :  { %v1105_v18 = vrot.slane %v1097_v62, %v2907_v0  ;;  %v1112_v9 = vrot.slane %v1098_v63, %v2907_v0 }
 0x4ca   :  { %v1115_v10 = vadd.f32 %v1105_v18, %v914_v2  ;;  %v1116_v12 = vadd.f32 %v1112_v9, %v916_v17 }
 0x4cc   :  { %v1117_v14 = vmul.f32 0.5, %v1115_v10  ;;  %v1118_v19 = vmul.f32 0.5, %v1116_v12  ;;  %v1127_v21 = vrot.slane %v1115_v10, 3  ;;  %v1128_v30 = vrot.slane %v1116_v12, 3 }
 0x4ce   :  { %2592 = vtanh.f32 %v1117_v14 }
 0x4cf   :  { %2594 = vtanh.f32 %v1118_v19 }
 0x4d0   :  { %2596 = vtanh.f32 %v1127_v21 }
 0x4d1   :  { %2598 = vtanh.f32 %v1128_v30 }
 0x4d8   :  { %v2593_v32 = vpop.eup %2592 }
 0x4d9   :  { %v2595_v34 = vpop.eup %2594  ;;  %v1121_v47 = vmul.f32 0.5, %v2593_v32 }
 0x4da   :  { %v1122_v50 = vmul.f32 0.5, %v2595_v34  ;;  %v2597_v49 = vpop.eup %2596 }
 0x4db   :  { %v1123_v4 = vadd.f32 0.5, %v1121_v47  ;;  %v2599_v39 = vpop.eup %2598 }
 0x4dc   :  { %v1124_v35 = vadd.f32 0.5, %v1122_v50 }
 0x4dd   :  { %v1135_v48 = vrot.slane %v1123_v4, 1  ;;  %v1141_v45 = vmul.f32 %v2597_v49, %v1123_v4  ;;  %v1147_v62 = vrot.slane %v1123_v4, 2 }
 0x4de   :  { %v1136_v36 = vrot.slane %v1124_v35, 1  ;;  %v1142_v59 = vmul.f32 %v2599_v39, %v1124_v35  ;;  %v1148_v2 = vrot.slane %v1124_v35, 2  ;;  %v1154_v35 = vld [vmem:[#allocation2 + $0x5] ss:$8 sm:$0xf] }
 0x4df   :  { %v1139_v44 = vmul.f32 %v1135_v48, %v3011_v27  ;;  %v1156_v48 = vld [vmem:[#allocation2 + $0x25] ss:$8 sm:$0xf] }
 0x4e0   :  { %v1140_v55 = vmul.f32 %v1136_v36, %v3013_v28 }
 0x4e1   :  { %v3059_v57 = vadd.f32 %v1141_v45, %v1139_v44 }
 0x4e2   :  { %v3061_v60 = vadd.f32 %v1142_v59, %v1140_v55 }
 0x4e3   :  { %2600 = vtanh.f32 %v3059_v57 }
 0x4e4   :  { %2602 = vtanh.f32 %v3061_v60 }
 0x4ed   :  { %v2601_v63 = vpop.eup %2600 }
 0x4ee   :  { %v2603_v17 = vpop.eup %2602  ;;  %v1151_v18 = vmul.f32 %v2601_v63, %v1147_v62 }
 0x4ef   :  { %v1152_v9 = vmul.f32 %v2603_v17, %v1148_v2 }
 0x4f1   :  { %v1159_v10 = vcombine.low %v1151_v18, %v1152_v9 }
 0x4f3   :  { %v1166_v27 = vrot.slane %v1159_v10, %v2907_v0 }
 0x4f5   :  { %v1173_v28 = vrot.slane %v1166_v27, %v2907_v0 }
 0x4f7   :  { %1240 = vmatmul.mubr.f32.vlgmr.msra.gmra.mrb[8].mxu0 %v1173_v28  ;;  %1311 = vmatmul.mubr.f32.vlgmr.msra.gmra.mrb[8].mxu1 %v1173_v28 }
 0x4f8   :  { %2383 = vmatpush1.bf16.msra.mxu0 %v2776_v7  ;;  %2415 = vmatpush1.bf16.msra.mxu1 %v2779_v11 }
 0x4f9   :  { %2385 = vmatprep.subr.bf16.mxu0 %v2783_v15  ;;  %2417 = vmatprep.subr.bf16.mxu1 %v2785_v16 }
 0x4fa   :  { %1479 = vmatprep.mubr.f32.mxu0 %v2690_v61  ;;  %1550 = vmatprep.mubr.f32.mxu1 %v2690_v61 }
 0x4fc   :  { %2387 = vmatpush1.bf16.msra.mxu0 %v2788_v20  ;;  %2419 = vmatpush1.bf16.msra.mxu1 %v2792_v24 }
 0x4fd   :  { %2389 = vmatprep.subr.bf16.mxu0 %v2794_v25  ;;  %2421 = vmatprep.subr.bf16.mxu1 %v2796_v29 }
 0x500   :  { %2391 = vmatpush1.bf16.msra.mxu0 %v2799_v33  ;;  %2423 = vmatpush1.bf16.msra.mxu1 %v2803_v37 }
 0x501   :  { %2393 = vmatprep.subr.bf16.mxu0 %v2805_v38  ;;  %2425 = vmatprep.subr.bf16.mxu1 %v2808_v42 }
 0x504   :  { %2395 = vmatpush1.bf16.msra.mxu0 %v2811_v51  ;;  %2427 = vmatpush1.bf16.msra.mxu1 %v2815_v52 }
 0x505   :  { %2397 = vmatprep.subr.bf16.mxu0 %v2817_v53  ;;  %2429 = vmatprep.subr.bf16.mxu1 %v2820_v58 }
 0x508   :  { %2399 = vmatpush1.bf16.msra.mxu0 %v2823_v3  ;;  %2431 = vmatpush1.bf16.msra.mxu1 %v2827_v5 }
 0x509   :  { %2401 = vmatprep.subr.bf16.mxu0 %v2829_v8  ;;  %2433 = vmatprep.subr.bf16.mxu1 %v2832_v13 }
 0x50c   :  { %2403 = vmatpush1.bf16.msra.mxu0 %v2835_v22  ;;  %2435 = vmatpush1.bf16.msra.mxu1 %v2839_v23 }
 0x50d   :  { %2405 = vmatprep.subr.bf16.mxu0 %v2841_v26  ;;  %2437 = vmatprep.subr.bf16.mxu1 %v2844_v31 }
 0x510   :  { %2407 = vmatpush1.bf16.msra.mxu0 %v2847_v40  ;;  %2439 = vmatpush1.bf16.msra.mxu1 %v2851_v41 }
 0x511   :  { %2409 = vmatprep.subr.bf16.mxu0 %v2853_v43  ;;  %2441 = vmatprep.subr.bf16.mxu1 %v2856_v46 }
 0x514   :  { %2411 = vmatpush1.bf16.msra.mxu0 %v2859_v54  ;;  %2443 = vmatpush1.bf16.msra.mxu1 %v2864_v56 }
 0x515   :  { %2445 = vmatprep.subr.bf16.mxu0 %v2772_v1  ;;  %2477 = vmatprep.subr.bf16.mxu1 %v2774_v6 }
 0x5ca   :  { %v1241_v12 = vpop.f32.mrb[8].mxu0  ;;  %v1312_v14 = vpop.f32.mrb[8].mxu1 }
 0x5cb   :  { %v1243_v19 = vpop.f32.mrb[9].mxu0  ;;  %v1314_v21 = vpop.f32.mrb[9].mxu1 }
 0x5cc   :  { %v1321_v30 = vcombine.low %v1241_v12, %v1243_v19  ;;  %v1322_v32 = vcombine.low %v1312_v14, %v1314_v21 }
 0x5ce   :  { %v1329_v34 = vrot.slane %v1321_v30, %v2907_v0  ;;  %v1336_v47 = vrot.slane %v1322_v32, %v2907_v0 }
 0x5d0   :  { %v1337_v50 = vcombine.low %v1329_v34, %v1336_v47  ;;  %v1338_v4 = vcombine.high %v1329_v34, %v1336_v47 }
 0x5d2   :  { %v1345_v49 = vrot.slane %v1337_v50, %v2907_v0  ;;  %v1352_v1 = vrot.slane %v1338_v4, %v2907_v0 }
 0x5d4   :  { %v1355_v36 = vadd.f32 %v1345_v49, %v1154_v35  ;;  %v1356_v6 = vadd.f32 %v1352_v1, %v1156_v48 }
 0x5d6   :  { %v1357_v39 = vmul.f32 0.5, %v1355_v36  ;;  %v1358_v44 = vmul.f32 0.5, %v1356_v6  ;;  %v1367_v45 = vrot.slane %v1355_v36, 3  ;;  %v1368_v55 = vrot.slane %v1356_v6, 3 }
 0x5d8   :  { %2604 = vtanh.f32 %v1357_v39 }
 0x5d9   :  { %2606 = vtanh.f32 %v1358_v44 }
 0x5da   :  { %2608 = vtanh.f32 %v1367_v45 }
 0x5db   :  { %2610 = vtanh.f32 %v1368_v55 }
 0x5e2   :  { %v2605_v59 = vpop.eup %2604 }
 0x5e3   :  { %v2607_v62 = vpop.eup %2606  ;;  %v1361_v63 = vmul.f32 0.5, %v2605_v59 }
 0x5e4   :  { %v1362_v2 = vmul.f32 0.5, %v2607_v62  ;;  %v2609_v10 = vpop.eup %2608 }
 0x5e5   :  { %v1363_v17 = vadd.f32 0.5, %v1361_v63  ;;  %v2611_v28 = vpop.eup %2610 }
 0x5e6   :  { %v1364_v18 = vadd.f32 0.5, %v1362_v2 }
 0x5e7   :  { %v1375_v9 = vrot.slane %v1363_v17, 1  ;;  %v1381_v14 = vmul.f32 %v2609_v10, %v1363_v17  ;;  %v1387_v34 = vrot.slane %v1363_v17, 2 }
 0x5e8   :  { %v1376_v27 = vrot.slane %v1364_v18, 1  ;;  %v1382_v21 = vmul.f32 %v2611_v28, %v1364_v18  ;;  %v1388_v50 = vrot.slane %v1364_v18, 2  ;;  %v1874_v28 = vld [vmem:[%s3237_s4 + $0x8] sm:$0xff] }
 0x5e9   :  { %v1379_v12 = vmul.f32 %v1375_v9, %v3059_v57 }
 0x5ea   :  { %v1380_v19 = vmul.f32 %v1376_v27, %v3061_v60  ;;  %v1873_v27 = vld [vmem:[%s3237_s4] sm:$0xff] }
 0x5eb   :  { %v3107_v30 = vadd.f32 %v1381_v14, %v1379_v12  ;;  %v2509_v12 = vpack.c.bf16 %v1874_v28, %v1873_v27  ;;  %v2692_v14 = vmov 0.0|0.0  }
 0x5ec   :  { %v3109_v32 = vadd.f32 %v1382_v21, %v1380_v19  ;;  %v1875_v19 = vld [vmem:[%s3237_s4 + $0x10] sm:$0xff]  ;;  %v1876_v21 = vld [vmem:[%s3237_s4 + $0x18] sm:$0xff] }
 0x5ed   :  { %2612 = vtanh.f32 %v3107_v30 }
 0x5ee   :  { %2614 = vtanh.f32 %v3109_v32 }
 0x5f7   :  { %v2613_v47 = vpop.eup %2612 }
 0x5f8   :  { %v2615_v4 = vpop.eup %2614  ;;  %v1391_v35 = vmul.f32 %v2613_v47, %v1387_v34  ;;  %v1878_v34 = vld [vmem:[%s3237_s4 + $0x28] sm:$0xff] }
 0x5f9   :  { %v1392_v48 = vmul.f32 %v2615_v4, %v1388_v50  ;;  %v1879_v50 = vld [vmem:[%s3237_s4 + $0x30] sm:$0xff]  ;;  %v1880_v4 = vld [vmem:[%s3237_s4 + $0x38] sm:$0xff] }
 0x5fb   :  { %v1399_v49 = vcombine.low %v1391_v35, %v1392_v48  ;;  %v2518_v35 = vpack.c.bf16 %v1880_v4, %v1879_v50  ;;  %v1881_v48 = vld [vmem:[%s3237_s4 + $0x40] sm:$0xff] }
 0x5fd   :  { %v1406_v57 = vrot.slane %v1399_v49, %v2907_v0  ;;  %v1882_v49 = vld [vmem:[%s3237_s4 + $0x48] sm:$0xff] }
 0x5ff   :  { %v1413_v60 = vrot.slane %v1406_v57, %v2907_v0  ;;  %v2521_v57 = vpack.c.bf16 %v1882_v49, %v1881_v48 }
 0x601   :  { %1480 = vmatmul.mubr.f32.vlgmr.msra.gmra.mrb[10].mxu0 %v1413_v60  ;;  %1551 = vmatmul.mubr.f32.vlgmr.msra.gmra.mrb[10].mxu1 %v1413_v60  ;;  %v1883_v60 = vld [vmem:[%s3237_s4 + $0x50] sm:$0xff] }
 0x602   :  { %2447 = vmatpush1.bf16.msra.mxu0 %v2776_v7  ;;  %2479 = vmatpush1.bf16.msra.mxu1 %v2779_v11 }
 0x603   :  { %2449 = vmatprep.subr.bf16.mxu0 %v2783_v15  ;;  %2481 = vmatprep.subr.bf16.mxu1 %v2785_v16 }
 0x604   :  { %1719 = vmatprep.mubr.f32.mxu0 %v2690_v61  ;;  %1790 = vmatprep.mubr.f32.mxu1 %v2690_v61 }
 0x606   :  { %2451 = vmatpush1.bf16.msra.mxu0 %v2788_v20  ;;  %2483 = vmatpush1.bf16.msra.mxu1 %v2792_v24 }
 0x607   :  { %2453 = vmatprep.subr.bf16.mxu0 %v2794_v25  ;;  %2485 = vmatprep.subr.bf16.mxu1 %v2796_v29 }
 0x60a   :  { %2455 = vmatpush1.bf16.msra.mxu0 %v2799_v33  ;;  %2487 = vmatpush1.bf16.msra.mxu1 %v2803_v37 }
 0x60b   :  { %2457 = vmatprep.subr.bf16.mxu0 %v2805_v38  ;;  %2489 = vmatprep.subr.bf16.mxu1 %v2808_v42  ;;  %v1394_v38 = vld [vmem:[#allocation2 + $0x6] ss:$8 sm:$0xf] }
 0x60c   :  { %v1396_v42 = vld [vmem:[#allocation2 + $0x26] ss:$8 sm:$0xf] }
 0x60e   :  { %2459 = vmatpush1.bf16.msra.mxu0 %v2811_v51  ;;  %2491 = vmatpush1.bf16.msra.mxu1 %v2815_v52 }
 0x60f   :  { %2461 = vmatprep.subr.bf16.mxu0 %v2817_v53  ;;  %2493 = vmatprep.subr.bf16.mxu1 %v2820_v58 }
 0x612   :  { %2463 = vmatpush1.bf16.msra.mxu0 %v2823_v3  ;;  %2495 = vmatpush1.bf16.msra.mxu1 %v2827_v5 }
 0x613   :  { %2465 = vmatprep.subr.bf16.mxu0 %v2829_v8  ;;  %2497 = vmatprep.subr.bf16.mxu1 %v2832_v13 }
 0x616   :  { %2467 = vmatpush1.bf16.msra.mxu0 %v2835_v22  ;;  %2499 = vmatpush1.bf16.msra.mxu1 %v2839_v23 }
 0x617   :  { %2469 = vmatprep.subr.bf16.mxu0 %v2841_v26  ;;  %2501 = vmatprep.subr.bf16.mxu1 %v2844_v31 }
 0x61a   :  { %2471 = vmatpush1.bf16.msra.mxu0 %v2847_v40  ;;  %2503 = vmatpush1.bf16.msra.mxu1 %v2851_v41 }
 0x61b   :  { %2473 = vmatprep.subr.bf16.mxu0 %v2853_v43  ;;  %2505 = vmatprep.subr.bf16.mxu1 %v2856_v46 }
 0x61e   :  { %2475 = vmatpush1.bf16.msra.mxu0 %v2859_v54  ;;  %2507 = vmatpush1.bf16.msra.mxu1 %v2864_v56 }
 0x61f   :  { %2508 = vmatprep.subr.bf16.mxu0 %v2692_v14 }
 0x6d4   :  { %v1481_v7 = vpop.f32.mrb[10].mxu0  ;;  %v1552_v11 = vpop.f32.mrb[10].mxu1 }
 0x6d5   :  { %v1483_v15 = vpop.f32.mrb[11].mxu0  ;;  %v1554_v16 = vpop.f32.mrb[11].mxu1 }
 0x6d6   :  { %v1561_v20 = vcombine.low %v1481_v7, %v1483_v15  ;;  %v1562_v24 = vcombine.low %v1552_v11, %v1554_v16  ;;  %v1884_v7 = vld [vmem:[%s3237_s4 + $0x58] sm:$0xff]  ;;  %v1885_v15 = vld [vmem:[%s3237_s4 + $0x60] sm:$0xff] }
 0x6d7   :  { %v2524_v11 = vpack.c.bf16 %v1884_v7, %v1883_v60 }
 0x6d8   :  { %v1569_v25 = vrot.slane %v1561_v20, %v2907_v0  ;;  %v1576_v29 = vrot.slane %v1562_v24, %v2907_v0  ;;  %v1887_v20 = vld [vmem:[%s3237_s4 + $0x70] sm:$0xff]  ;;  %v1888_v24 = vld [vmem:[%s3237_s4 + $0x78] sm:$0xff] }
 0x6da   :  { %v1577_v33 = vcombine.low %v1569_v25, %v1576_v29  ;;  %v1578_v37 = vcombine.high %v1569_v25, %v1576_v29  ;;  %v2530_v25 = vpack.c.bf16 %v1888_v24, %v1887_v20 }
 0x6dc   :  { %v1585_v51 = vrot.slane %v1577_v33, %v2907_v0  ;;  %v1592_v52 = vrot.slane %v1578_v37, %v2907_v0 }
 0x6de   :  { %v1595_v53 = vadd.f32 %v1585_v51, %v1394_v38  ;;  %v1596_v58 = vadd.f32 %v1592_v52, %v1396_v42 }
 0x6e0   :  { %v1597_v3 = vmul.f32 0.5, %v1595_v53  ;;  %v1598_v5 = vmul.f32 0.5, %v1596_v58  ;;  %v1607_v8 = vrot.slane %v1595_v53, 3  ;;  %v1608_v13 = vrot.slane %v1596_v58, 3 }
 0x6e2   :  { %2616 = vtanh.f32 %v1597_v3 }
 0x6e3   :  { %2618 = vtanh.f32 %v1598_v5  ;;  %v1634_v5 = vld [vmem:[#allocation2 + $0x7] ss:$8 sm:$0xf] }
 0x6e4   :  { %2620 = vtanh.f32 %v1607_v8  ;;  %v1636_v8 = vld [vmem:[#allocation2 + $0x27] ss:$8 sm:$0xf] }
 0x6e5   :  { %2622 = vtanh.f32 %v1608_v13 }
 0x6ec   :  { %v2617_v22 = vpop.eup %2616 }
 0x6ed   :  { %v2619_v23 = vpop.eup %2618  ;;  %v1601_v26 = vmul.f32 0.5, %v2617_v22 }
 0x6ee   :  { %v1602_v31 = vmul.f32 0.5, %v2619_v23  ;;  %v2621_v46 = vpop.eup %2620 }
 0x6ef   :  { %v1603_v40 = vadd.f32 0.5, %v1601_v26  ;;  %v2623_v56 = vpop.eup %2622 }
 0x6f0   :  { %v1604_v41 = vadd.f32 0.5, %v1602_v31 }
 0x6f1   :  { %v1615_v43 = vrot.slane %v1603_v40, 1  ;;  %v1621_v36 = vmul.f32 %v2621_v46, %v1603_v40  ;;  %v1627_v55 = vrot.slane %v1603_v40, 2 }
 0x6f2   :  { %v1616_v54 = vrot.slane %v1604_v41, 1  ;;  %v1622_v39 = vmul.f32 %v2623_v56, %v1604_v41  ;;  %v1628_v62 = vrot.slane %v1604_v41, 2 }
 0x6f3   :  { %v1619_v1 = vmul.f32 %v1615_v43, %v3107_v30  ;;  %v2512_v30 = vpack.c.bf16 %v1876_v21, %v1875_v19 }
 0x6f4   :  { %v1620_v6 = vmul.f32 %v1616_v54, %v3109_v32  ;;  %v1877_v32 = vld [vmem:[%s3237_s4 + $0x20] sm:$0xff] }
 0x6f5   :  { %v3153_v44 = vadd.f32 %v1621_v36, %v1619_v1  ;;  %v2515_v47 = vpack.c.bf16 %v1878_v34, %v1877_v32 }
 0x6f6   :  { %v3155_v45 = vadd.f32 %v1622_v39, %v1620_v6 }
 0x6f7   :  { %2624 = vtanh.f32 %v3153_v44 }
 0x6f8   :  { %2626 = vtanh.f32 %v3155_v45 }
 0x701   :  { %v2625_v59 = vpop.eup %2624 }
 0x702   :  { %v2627_v63 = vpop.eup %2626  ;;  %v1631_v2 = vmul.f32 %v2625_v59, %v1627_v55 }
 0x703   :  { %v1632_v17 = vmul.f32 %v2627_v63, %v1628_v62 }
 0x705   :  { %v1639_v18 = vcombine.low %v1631_v2, %v1632_v17 }
 0x707   :  { %v1646_v9 = vrot.slane %v1639_v18, %v2907_v0 }
 0x709   :  { %v1653_v10 = vrot.slane %v1646_v9, %v2907_v0 }
 0x70b   :  { %1720 = vmatmul.mubr.f32.vlgmr.msra.gmra.mrb[12].mxu0 %v1653_v10  ;;  %1791 = vmatmul.mubr.f32.vlgmr.msra.gmra.mrb[12].mxu1 %v1653_v10 }
 0x70c   :  { %2510 = vmatpush3.bf16.msra.mxu0 %v2509_v12  ;;  %2057 = vmatprep.mubr.msk.f32.mxu0 %vm2693_vm1, %v2690_v61  ;;  %v1886_v61 = vld [vmem:[%s3237_s4 + $0x68] sm:$0xff] }
 0x70d   :  { %2511 = vmatprep.subr.bf16.mxu0 %v2692_v14  ;;  %v2527_v16 = vpack.c.bf16 %v1886_v61, %v1885_v15 }
 0x710   :  { %2513 = vmatpush3.bf16.msra.mxu0 %v2512_v30 }
 0x711   :  { %2514 = vmatprep.subr.bf16.mxu0 %v2692_v14 }
 0x714   :  { %2516 = vmatpush3.bf16.msra.mxu0 %v2515_v47 }
 0x715   :  { %2517 = vmatprep.subr.bf16.mxu0 %v2692_v14 }
 0x718   :  { %2519 = vmatpush3.bf16.msra.mxu0 %v2518_v35 }
 0x719   :  { %2520 = vmatprep.subr.bf16.mxu0 %v2692_v14 }
 0x71c   :  { %2522 = vmatpush3.bf16.msra.mxu0 %v2521_v57 }
 0x71d   :  { %2523 = vmatprep.subr.bf16.mxu0 %v2692_v14 }
 0x720   :  { %2525 = vmatpush3.bf16.msra.mxu0 %v2524_v11 }
 0x721   :  { %2526 = vmatprep.subr.bf16.mxu0 %v2692_v14 }
 0x724   :  { %2528 = vmatpush3.bf16.msra.mxu0 %v2527_v16 }
 0x725   :  { %2529 = vmatprep.subr.bf16.mxu0 %v2692_v14 }
 0x728   :  { %2531 = vmatpush3.bf16.msra.mxu0 %v2530_v25 }
 0x7de   :  { %v1721_v29 = vpop.f32.mrb[12].mxu0  ;;  %v1792_v33 = vpop.f32.mrb[12].mxu1 }
 0x7df   :  { %v1723_v37 = vpop.f32.mrb[13].mxu0  ;;  %v1794_v38 = vpop.f32.mrb[13].mxu1 }
 0x7e0   :  { %v1801_v42 = vcombine.low %v1721_v29, %v1723_v37  ;;  %v1802_v51 = vcombine.low %v1792_v33, %v1794_v38 }
 0x7e2   :  { %v1809_v52 = vrot.slane %v1801_v42, %v2907_v0  ;;  %v1816_v53 = vrot.slane %v1802_v51, %v2907_v0 }
 0x7e4   :  { %v1817_v58 = vcombine.low %v1809_v52, %v1816_v53  ;;  %v1818_v3 = vcombine.high %v1809_v52, %v1816_v53 }
 0x7e6   :  { %v1825_v13 = vrot.slane %v1817_v58, %v2907_v0  ;;  %v1832_v22 = vrot.slane %v1818_v3, %v2907_v0 }
 0x7e8   :  { %v1835_v23 = vadd.f32 %v1825_v13, %v1634_v5  ;;  %v1836_v26 = vadd.f32 %v1832_v22, %v1636_v8 }
 0x7ea   :  { %v1837_v31 = vmul.f32 0.5, %v1835_v23  ;;  %v1838_v40 = vmul.f32 0.5, %v1836_v26  ;;  %v1847_v41 = vrot.slane %v1835_v23, 3  ;;  %v1848_v43 = vrot.slane %v1836_v26, 3 }
 0x7ec   :  { %2628 = vtanh.f32 %v1837_v31 }
 0x7ed   :  { %2630 = vtanh.f32 %v1838_v40 }
 0x7ee   :  { %2632 = vtanh.f32 %v1847_v41 }
 0x7ef   :  { %2634 = vtanh.f32 %v1848_v43 }
 0x7f6   :  { %v2629_v46 = vpop.eup %2628 }
 0x7f7   :  { %v2631_v54 = vpop.eup %2630  ;;  %v1841_v56 = vmul.f32 0.5, %v2629_v46 }
 0x7f8   :  { %v1842_v1 = vmul.f32 0.5, %v2631_v54  ;;  %v2633_v55 = vpop.eup %2632 }
 0x7f9   :  { %v1843_v36 = vadd.f32 0.5, %v1841_v56  ;;  %v2635_v62 = vpop.eup %2634 }
 0x7fa   :  { %v1844_v6 = vadd.f32 0.5, %v1842_v1 }
 0x7fb   :  { %v1855_v39 = vrot.slane %v1843_v36, 1  ;;  %v1861_v2 = vmul.f32 %v2633_v55, %v1843_v36  ;;  %v1867_v27 = vrot.slane %v1843_v36, 2 }
 0x7fc   :  { %v1856_v59 = vrot.slane %v1844_v6, 1  ;;  %v1862_v18 = vmul.f32 %v2635_v62, %v1844_v6  ;;  %v1868_v12 = vrot.slane %v1844_v6, 2 }
 0x7fd   :  { %v1859_v63 = vmul.f32 %v1855_v39, %v3153_v44  ;;  %v2006_v44 = vld [vmem:[%s3238_s5] ss:$0 sm:$0xff] }
 0x7fe   :  { %v1860_v17 = vmul.f32 %v1856_v59, %v3155_v45 }
 0x7ff   :  { %v1863_v9 = vadd.f32 %v1861_v2, %v1859_v63 }
 0x800   :  { %v1864_v10 = vadd.f32 %v1862_v18, %v1860_v17 }
 0x801   :  { %2636 = vtanh.f32 %v1863_v9 }
 0x802   :  { %2638 = vtanh.f32 %v1864_v10 }
 0x80b   :  { %v2637_v28 = vpop.eup %2636 }
 0x80c   :  { %v2639_v14 = vpop.eup %2638  ;;  %v1871_v19 = vmul.f32 %v2637_v28, %v1867_v27 }
 0x80d   :  { %v1872_v21 = vmul.f32 %v2639_v14, %v1868_v12 }
 0x80f   :  { %v1898_v30 = vcombine.low %v1871_v19, %v1872_v21 }
 0x811   :  { %v1905_v32 = vrot.slane %v1898_v30, %v2907_v0 }
 0x813   :  { %v1912_v34 = vrot.slane %v1905_v32, %v2907_v0 }
 0x815   :  { %2058 = vmatmul.mubr.f32.vlgmr.msra.gmra.mrb[14].mxu0 %v1912_v34 }
 0x8e8   :  { %v1980_v45 = vpop.f32.mrb[14].mxu0 }
 0x8e9   :  { %v1981_v47 = vadd.f32 %v2006_v44, %v1980_v45  ;;  %v2059_v50 = vpop.f32.mrb[15].mxu0 }
 0x8eb   :  { %1985 = vst.msk [vmem:[#allocation5] sm:$0x3] %vm1984_vm2, %v1981_v47 }
 0x8ec   :  { %2673 = shalt.err (!%p2670_p12)
}
 0x8ed   :  { %s2674_s23 = scalar_lea.hbm %s3239_s6, 32 }
 0x8ee   :  { %p2675_p13 = scmp.ne.s32.totalorder %s3239_s6, %s2674_s23  ;;  %p2678_p0 = scmp.lt.u32.totalorder %s2674_s23, %s3239_s6 }
 0x8f0   :  { %p2680_p1 = pnand %p2678_p0, %p2675_p13 }
 0x8f2   :  { %2683 = shalt.err (!%p2680_p1)
}
 0x8f3   :  { %1995 = dma.vmem_to_hbm [thread:$0]  %s1993_s19, 32, %s3239_s6, [#allocation6]  }
 0x8f4   :  { %2686 = dma.done.wait [#allocation6], 32  }
 0x8f5   :  { %2687 = vsyncadd [#allocation6], 4294967264 }
 0x8f6   :  { %1999 = vsyncpa [#allocation6], 1 }
 0x8f7   :  { %2000 = vsyncmov [#allocation4] }
 0x8fa   :  { %s2001_s29 = vpop.sfrf %2000 }
 0x8fb   :  { %p2007_p2 = scmp.ne.s32.totalorder %s2001_s29, 0 }
 0x8fd   :  { %2005 = shalt.err (%p2007_p2)  }

</bundles_post_ra>
